<compile_context>
chip_gen: v7x
topology: tpu7x:2x2x1
jax: 0.10.0
libtpu: 0.0.40
codegen_flags: <defaults>
</compile_context>

<pallas_src>
import jax
import jax.numpy as jnp
from jax import lax
from jax.experimental import pallas as pl
from jax.experimental.pallas import tpu as pltpu


# ------------------------------ kernel body ----------------------------------


def _make_kernel(H, W, Cin, Cout, g1, g2, gr, has_res_conv):
    WCi, WCo = W * Cin, W * Cout

    def pointwise(z, blk_ref, bias_ref, g, ci, co):
        """Lane-group block-diagonal 1x1 conv: (M, W*ci) -> (M, W*co)."""
        blk = blk_ref[...]                       # (g*ci, g*co) bf16, BN folded
        zb = z.astype(jnp.bfloat16)              # bf16 MXU operands, f32 accum
        gin = g * ci
        ng = W // g
        if ng == 1:
            out = jnp.dot(zb, blk, preferred_element_type=jnp.float32)
        else:
            out = jnp.concatenate(
                [jnp.dot(zb[:, k * gin:(k + 1) * gin], blk,
                         preferred_element_type=jnp.float32)
                 for k in range(ng)], axis=1)
        return out + bias_ref[...]               # (1, W*co) bias broadcast

    def kernel(*refs):
        if has_res_conv:
            (x_ref, dw1_ref, b1_ref, pw1_ref, b2_ref,
             dw2_ref, b3_ref, pw2_ref, b4_ref, pwr_ref, br_ref, out_ref) = refs
        else:
            (x_ref, dw1_ref, b1_ref, pw1_ref, b2_ref,
             dw2_ref, b3_ref, pw2_ref, b4_ref, out_ref) = refs
            pwr_ref = br_ref = None

        x = x_ref[...].astype(jnp.float32)       # (Mb, W*Cin), lane-dense
        Mb = x.shape[0]                          # block_n * H rows

        # Narrow masks: several whole images are folded into Mb rows, so the
        # vertical neighbourhood is gated on (row % H); lane masks gate the
        # horizontal neighbourhood (lane = w*C + c).
        rh = lax.broadcasted_iota(jnp.int32, (Mb, 1), 0) % H
        row_has_up = rh > 0                      # row h-1 exists in this image
        row_has_dn = rh < H - 1                  # row h+1 exists in this image
        lane_i = lax.broadcasted_iota(jnp.int32, (1, WCi), 1)
        lane_o = lax.broadcasted_iota(jnp.int32, (1, WCo), 1)

        def dw3x3(z, taps_ref, C, lane_idx):
            """Depthwise 3x3, stride 1, pad 1, in the (Mb, W*C) layout."""
            WC = z.shape[1]
            z_dn = jnp.where(row_has_up, pltpu.roll(z, shift=1, axis=0), 0.0)
            z_up = jnp.where(row_has_dn,
                             pltpu.roll(z, shift=Mb - 1, axis=0), 0.0)
            rows = (z_dn, z, z_up)               # ky = 0, 1, 2
            taps = taps_ref[...]                 # (9, W*C), period-C lanes
            t = [None, None, None]
            for kx in range(3):
                for ky in range(3):
                    k = ky * 3 + kx
                    term = rows[ky] * taps[k:k + 1, :]
                    t[kx] = term if t[kx] is None else t[kx] + term
            # Column (w) shifts AFTER the weighted row sums: legal because the
            # tiled taps are periodic with period C == the lane shift.
            left = jnp.where(lane_idx >= C,
                             pltpu.roll(t[0], shift=C, axis=1), 0.0)
            right = jnp.where(lane_idx < WC - C,
                              pltpu.roll(t[2], shift=WC - C, axis=1), 0.0)
            return left + t[1] + right

        # conv_dw(inp, oup): depthwise 3x3 + BN + ReLU, then 1x1 + BN + ReLU.
        y = jnp.maximum(dw3x3(x, dw1_ref, Cin, lane_i) + b1_ref[...], 0.0)
        y = jnp.maximum(pointwise(y, pw1_ref, b2_ref, g1, Cin, Cout), 0.0)
        # depthwise 3x3 (oup) + BN + ReLU, then 1x1 (oup->oup) + BN (no ReLU).
        y = jnp.maximum(dw3x3(y, dw2_ref, Cout, lane_o) + b3_ref[...], 0.0)
        y = pointwise(y, pw2_ref, b4_ref, g2, Cout, Cout)

        # Residual branch.
        if has_res_conv:
            r = pointwise(x, pwr_ref, br_ref, gr, Cin, Cout)
        else:
            r = x                                 # identity shortcut

        out_ref[...] = jnp.maximum(y + r, 0.0).astype(out_ref.dtype)

    return kernel


# -------------------------------- wrappers ------------------------------------


def _const_spec(arr):
    nd = arr.ndim
    return pl.BlockSpec(arr.shape, lambda n, _nd=nd: (0,) * _nd)


def _choose_group_w(W, ci, co, target=256):
    """Largest spatial group width g | W whose pointwise block columns stay
    within ~`target` lanes and whose lane slices stay 128-aligned."""
    for g in range(W, 0, -1):
        if W % g:
            continue
        if (g * max(ci, co) <= target and (g * ci) % 128 == 0
                and (g * co) % 128 == 0):
            return g
    return W


def residual_block_lane(x_lane, packed):
    """Fused ResidualBlock forward on lane-dense activations.

    x_lane: (N, H, W*Cin), lane = w*Cin + c.  Returns (N, H, W*Cout).
    Keeping this format between consecutive blocks avoids the NCHW transposes.
    """
    N, H, WCi = x_lane.shape
    meta = packed["meta"]
    W, Cin, Cout = meta["W"], meta["Cin"], meta["Cout"]
    assert WCi == W * Cin, (WCi, W, Cin)
    WCo = W * Cout
    has_res_conv = "pwr_blk" in packed
    if not has_res_conv:
        assert Cin == Cout, "identity shortcut requires Cin == Cout"

    g1 = packed["pw1_blk"].shape[0] // Cin
    g2 = packed["pw2_blk"].shape[0] // Cout
    gr = packed["pwr_blk"].shape[0] // Cin if has_res_conv else 1

    # Fold whole images into the matmul M dimension (target M >= 128 rows
    # when the batch allows it).
    block_n = min(N, max(1, pl.cdiv(128, H)))
    while N % block_n:
        block_n -= 1
    Mb = block_n * H

    x2 = x_lane.reshape(N * H, WCi)              # free, layout-preserving

    param_list = [
        packed["dw1_t"], packed["b1_t"], packed["pw1_blk"], packed["b2_t"],
        packed["dw2_t"], packed["b3_t"], packed["pw2_blk"], packed["b4_t"],
    ]
    if has_res_conv:
        param_list += [packed["pwr_blk"], packed["br_t"]]

    in_specs = [pl.BlockSpec((Mb, WCi), lambda n: (n, 0))]
    in_specs += [_const_spec(p) for p in param_list]
    out_specs = pl.BlockSpec((Mb, WCo), lambda n: (n, 0))

    kernel = _make_kernel(H, W, Cin, Cout, g1, g2, gr, has_res_conv)

    out2 = pl.pallas_call(
        kernel,
        out_shape=jax.ShapeDtypeStruct((N * H, WCo), x_lane.dtype),
        grid_spec=pltpu.PrefetchScalarGridSpec(
            num_scalar_prefetch=0,
            grid=(N // block_n,),
            in_specs=in_specs,
            out_specs=out_specs,
        ),
        compiler_params=pltpu.CompilerParams(
            dimension_semantics=("parallel",)),
    )(x2, *param_list)

    return out2.reshape(N, H, WCo)


def residual_block(x_nchw, packed):
    """NCHW-boundary wrapper (matches the PyTorch module interface)."""
    N, Cin, H, W = x_nchw.shape
    assert packed["meta"]["W"] == W and packed["meta"]["Cin"] == Cin
    Cout = packed["meta"]["Cout"]
    x_lane = jnp.transpose(x_nchw, (0, 2, 3, 1)).reshape(N, H, W * Cin)
    out = residual_block_lane(x_lane, packed)
    return jnp.transpose(out.reshape(N, H, W, Cout), (0, 3, 1, 2))


# ----------------------- parameter construction / packing ---------------------


def _bn_params(key, c):
    kg, kb, km, kv = jax.random.split(key, 4)
    gamma = 1.0 + 0.1 * jax.random.normal(kg, (c,), jnp.float32)
    beta = 0.1 * jax.random.normal(kb, (c,), jnp.float32)
    mean = 0.1 * jax.random.normal(km, (c,), jnp.float32)
    var = 1.0 + 0.1 * jax.random.uniform(kv, (c,), jnp.float32)
    scale = gamma / jnp.sqrt(var + 1e-5)
    bias = beta - mean * scale
    return scale, bias


def make_params(key, inp, oup):
    """Raw (PyTorch-equivalent) parameters, eval-mode BN as (scale, bias)."""
    ks = jax.random.split(key, 10)
    p = {}
    p["dw1"] = 0.2 * jax.random.normal(ks[0], (3, 3, inp), jnp.float32)
    p["s1"], p["b1"] = _bn_params(ks[1], inp)
    p["pw1"] = 0.2 * jax.random.normal(ks[2], (inp, oup), jnp.float32)
    p["s2"], p["b2"] = _bn_params(ks[3], oup)
    p["dw2"] = 0.2 * jax.random.normal(ks[4], (3, 3, oup), jnp.float32)
    p["s3"], p["b3"] = _bn_params(ks[5], oup)
    p["pw2"] = 0.2 * jax.random.normal(ks[6], (oup, oup), jnp.float32)
    p["s4"], p["b4"] = _bn_params(ks[7], oup)
    if inp == oup:
        p["pwr"] = None      # identity shortcut (PyTorch: self.residual = None)
    else:
        p["pwr"] = 0.2 * jax.random.normal(ks[8], (inp, oup), jnp.float32)
        p["sr"], p["br"] = _bn_params(ks[9], oup)
    return p


def pack_params(p, W):
    """One-time weight transform: fold BN scales, tile depthwise taps/biases
    to the lane-dense layout, and build bf16 lane-group block-diagonal 1x1
    weights (block size capped at ~256 lanes)."""
    Cin = p["dw1"].shape[-1]
    Cout = p["pw1"].shape[-1]
    g1 = _choose_group_w(W, Cin, Cout)
    g2 = _choose_group_w(W, Cout, Cout)

    def tile_lane(v, c):                          # (c,) -> (1, W*c), f32
        return jnp.tile(v.reshape(1, c), (1, W))

    def pw_block(w, scale, g):                    # (ci, co) -> (g*ci, g*co) bf16
        return jnp.kron(jnp.eye(g, dtype=jnp.float32),
                        w * scale[None, :]).astype(jnp.bfloat16)

    packed = {
        "meta": {"W": W, "Cin": Cin, "Cout": Cout},
        "dw1_t": jnp.tile((p["dw1"] * p["s1"]).reshape(9, Cin), (1, W)),
        "b1_t": tile_lane(p["b1"], Cin),
        "pw1_blk": pw_block(p["pw1"], p["s2"], g1),
        "b2_t": tile_lane(p["b2"], Cout),
        "dw2_t": jnp.tile((p["dw2"] * p["s3"]).reshape(9, Cout), (1, W)),
        "b3_t": tile_lane(p["b3"], Cout),
        "pw2_blk": pw_block(p["pw2"], p["s4"], g2),
        "b4_t": tile_lane(p["b4"], Cout),
    }
    if p.get("pwr") is not None:
        gr = _choose_group_w(W, Cin, Cout)
        packed["pwr_blk"] = pw_block(p["pwr"], p["sr"], gr)
        packed["br_t"] = tile_lane(p["br"], Cout)
    return packed


# --------------------------------- reference ----------------------------------


def residual_block_ref(x_nchw, p):
    """Pure-JAX reference (NHWC convs via lax, all f32) for correctness."""
    x = jnp.transpose(x_nchw, (0, 2, 3, 1))
    dn = ("NHWC", "HWIO", "NHWC")

    def dw(z, w):  # w: (3,3,C)
        c = w.shape[-1]
        return lax.conv_general_dilated(
            z, w.reshape(3, 3, 1, c), (1, 1), ((1, 1), (1, 1)),
            dimension_numbers=dn, feature_group_count=c)

    def pw(z, w):  # w: (Ci, Co)
        ci, co = w.shape
        return lax.conv_general_dilated(
            z, w.reshape(1, 1, ci, co), (1, 1), ((0, 0), (0, 0)),
            dimension_numbers=dn)

    y = jnp.maximum(dw(x, p["dw1"]) * p["s1"] + p["b1"], 0.0)
    y = jnp.maximum(pw(y, p["pw1"]) * p["s2"] + p["b2"], 0.0)
    y = jnp.maximum(dw(y, p["dw2"]) * p["s3"] + p["b3"], 0.0)
    y = pw(y, p["pw2"]) * p["s4"] + p["b4"]
    if p.get("pwr") is None:
        r = x
    else:
        r = pw(x, p["pwr"]) * p["sr"] + p["br"]
    out = jnp.maximum(y + r, 0.0)
    return jnp.transpose(out, (0, 3, 1, 2))


# ----------------------------------- main --------------------------------------


if __name__ == "__main__":
    key = jax.random.PRNGKey(0)
    k1, k2, k3, k4 = jax.random.split(key, 4)

    N, H, W = 2, 16, 16
    # Tolerance reflects the bf16 MXU operands (f32 accumulation); semantic or
    # layout bugs would produce O(1) errors and still fail this check.
    ATOL = RTOL = 2e-2

    # Config 1: inp != oup -> 1x1-conv residual branch (inp=8, oup=16).
    x1 = jax.random.normal(k1, (N, 8, H, W), jnp.float32)      # NCHW
    p1 = make_params(k2, 8, 16)
    out1 = jax.block_until_ready(residual_block(x1, pack_params(p1, W)))
    ref1 = residual_block_ref(x1, p1)
    assert out1.shape == (N, 16, H, W), out1.shape
    assert jnp.allclose(out1, ref1, atol=ATOL, rtol=RTOL), float(
        jnp.max(jnp.abs(out1 - ref1)))

    # Config 2: inp == oup -> identity shortcut, residual matmul skipped.
    x2 = jax.random.normal(k3, (N, 8, H, W), jnp.float32)
    p2 = make_params(k4, 8, 8)
    out2 = jax.block_until_ready(residual_block(x2, pack_params(p2, W)))
    ref2 = residual_block_ref(x2, p2)
    assert out2.shape == (N, 8, H, W), out2.shape
    assert jnp.allclose(out2, ref2, atol=ATOL, rtol=RTOL), float(
        jnp.max(jnp.abs(out2 - ref2)))

    print("KERNEL_OK")
</pallas_src>

<mosaic_0001>
module attributes {stable_mosaic.version = 11 : i64} {
  func.func @kernel(%arg0: i32, %arg1: memref<32x128xf32, #tpu.memory_space<vmem>>, %arg2: memref<9x128xf32, #tpu.memory_space<vmem>>, %arg3: memref<1x128xf32, #tpu.memory_space<vmem>>, %arg4: memref<128x256xbf16, #tpu.memory_space<vmem>>, %arg5: memref<1x256xf32, #tpu.memory_space<vmem>>, %arg6: memref<9x256xf32, #tpu.memory_space<vmem>>, %arg7: memref<1x256xf32, #tpu.memory_space<vmem>>, %arg8: memref<256x256xbf16, #tpu.memory_space<vmem>>, %arg9: memref<1x256xf32, #tpu.memory_space<vmem>>, %arg10: memref<128x256xbf16, #tpu.memory_space<vmem>>, %arg11: memref<1x256xf32, #tpu.memory_space<vmem>>, %arg12: memref<32x256xf32, #tpu.memory_space<vmem>>) attributes {dimension_semantics = [#tpu.dimension_semantics<parallel>], iteration_bounds = array<i64: 1>, scalar_prefetch = 0 : i64, scratch_operands = 0 : i64, tpu.core_type = #tpu.core_type<tc>, window_params = [{transform_indices = @transform_0, window_bounds = array<i64: 32, 128>}, {pipeline_mode = #tpu.pipeline_mode<synchronous>, transform_indices = @transform_1, window_bounds = array<i64: 9, 128>}, {pipeline_mode = #tpu.pipeline_mode<synchronous>, transform_indices = @transform_2, window_bounds = array<i64: 1, 128>}, {pipeline_mode = #tpu.pipeline_mode<synchronous>, transform_indices = @transform_3, window_bounds = array<i64: 128, 256>}, {pipeline_mode = #tpu.pipeline_mode<synchronous>, transform_indices = @transform_4, window_bounds = array<i64: 1, 256>}, {pipeline_mode = #tpu.pipeline_mode<synchronous>, transform_indices = @transform_5, window_bounds = array<i64: 9, 256>}, {pipeline_mode = #tpu.pipeline_mode<synchronous>, transform_indices = @transform_6, window_bounds = array<i64: 1, 256>}, {pipeline_mode = #tpu.pipeline_mode<synchronous>, transform_indices = @transform_7, window_bounds = array<i64: 256, 256>}, {pipeline_mode = #tpu.pipeline_mode<synchronous>, transform_indices = @transform_8, window_bounds = array<i64: 1, 256>}, {pipeline_mode = #tpu.pipeline_mode<synchronous>, transform_indices = @transform_9, window_bounds = array<i64: 128, 256>}, {pipeline_mode = #tpu.pipeline_mode<synchronous>, transform_indices = @transform_10, window_bounds = array<i64: 1, 256>}, {transform_indices = @transform_11, window_bounds = array<i64: 32, 256>}]} {
    %c0 = arith.constant 0 : index
    %c0_0 = arith.constant 0 : index
    %0 = vector.load %arg1[%c0, %c0_0] : memref<32x128xf32, #tpu.memory_space<vmem>>, vector<32x128xf32>
    %1 = tpu.iota {dimensions = array<i32: 0>} : vector<32x1xi32>
    %c16_i32 = arith.constant 16 : i32
    %c0_i32 = arith.constant 0 : i32
    %2 = arith.cmpi eq, %c16_i32, %c0_i32 : i32
    %c1_i32 = arith.constant 1 : i32
    %3 = arith.select %2, %c1_i32, %c16_i32 : i32
    %4 = vector.broadcast %3 : i32 to vector<32x1xi32>
    %5 = arith.remsi %1, %4 : vector<32x1xi32>
    %c0_i32_1 = arith.constant 0 : i32
    %6 = vector.broadcast %c0_i32_1 : i32 to vector<32x1xi32>
    %7 = arith.cmpi ne, %5, %6 : vector<32x1xi32>
    %c0_i32_2 = arith.constant 0 : i32
    %8 = vector.broadcast %c0_i32_2 : i32 to vector<32x1xi32>
    %9 = arith.cmpi slt, %5, %8 : vector<32x1xi32>
    %c0_i32_3 = arith.constant 0 : i32
    %10 = arith.cmpi slt, %3, %c0_i32_3 : i32
    %11 = vector.broadcast %10 : i1 to vector<32x1xi1>
    %12 = vector.broadcast %11 : vector<32x1xi1> to vector<32x1xi1>
    %13 = arith.xori %9, %12 : vector<32x1xi1>
    %14 = arith.andi %13, %7 : vector<32x1xi1>
    %15 = vector.broadcast %3 : i32 to vector<32x1xi32>
    %16 = arith.addi %5, %15 : vector<32x1xi32>
    %17 = arith.select %14, %16, %5 : vector<32x1xi1>, vector<32x1xi32>
    %c0_i32_4 = arith.constant 0 : i32
    %18 = vector.broadcast %c0_i32_4 : i32 to vector<32x1xi32>
    %19 = arith.cmpi sgt, %17, %18 : vector<32x1xi32>
    %c15_i32 = arith.constant 15 : i32
    %20 = vector.broadcast %c15_i32 : i32 to vector<32x1xi32>
    %21 = arith.cmpi slt, %17, %20 : vector<32x1xi32>
    %22 = tpu.iota {dimensions = array<i32: 1>} : vector<1x128xi32>
    %23 = tpu.iota {dimensions = array<i32: 1>} : vector<1x256xi32>
    %c1_i32_5 = arith.constant 1 : i32
    %24 = tpu.dynamic_rotate %0 by %c1_i32_5 dim 0 : vector<32x128xf32>, i32 -> vector<32x128xf32>
    %cst = arith.constant 0.000000e+00 : f32
    %25 = vector.shape_cast %19 : vector<32x1xi1> to vector<32x1xi1>
    %26 = vector.broadcast %25 : vector<32x1xi1> to vector<32x128xi1>
    %27 = vector.broadcast %cst : f32 to vector<32x128xf32>
    %28 = arith.select %26, %24, %27 : vector<32x128xi1>, vector<32x128xf32>
    %c31_i32 = arith.constant 31 : i32
    %29 = tpu.dynamic_rotate %0 by %c31_i32 dim 0 : vector<32x128xf32>, i32 -> vector<32x128xf32>
    %cst_6 = arith.constant 0.000000e+00 : f32
    %30 = vector.shape_cast %21 : vector<32x1xi1> to vector<32x1xi1>
    %31 = vector.broadcast %30 : vector<32x1xi1> to vector<32x128xi1>
    %32 = vector.broadcast %cst_6 : f32 to vector<32x128xf32>
    %33 = arith.select %31, %29, %32 : vector<32x128xi1>, vector<32x128xf32>
    %c0_7 = arith.constant 0 : index
    %c0_8 = arith.constant 0 : index
    %34 = vector.load %arg2[%c0_7, %c0_8] : memref<9x128xf32, #tpu.memory_space<vmem>>, vector<9x128xf32>
    %35 = vector.extract_strided_slice %34 {offsets = [0, 0], sizes = [1, 128], strides = [1, 1]} : vector<9x128xf32> to vector<1x128xf32>
    %36 = vector.broadcast %35 : vector<1x128xf32> to vector<32x128xf32>
    %37 = arith.mulf %28, %36 : vector<32x128xf32>
    %38 = vector.extract_strided_slice %34 {offsets = [3, 0], sizes = [1, 128], strides = [1, 1]} : vector<9x128xf32> to vector<1x128xf32>
    %39 = vector.broadcast %38 : vector<1x128xf32> to vector<32x128xf32>
    %40 = arith.mulf %0, %39 : vector<32x128xf32>
    %41 = arith.addf %37, %40 : vector<32x128xf32>
    %42 = vector.extract_strided_slice %34 {offsets = [6, 0], sizes = [1, 128], strides = [1, 1]} : vector<9x128xf32> to vector<1x128xf32>
    %43 = vector.broadcast %42 : vector<1x128xf32> to vector<32x128xf32>
    %44 = arith.mulf %33, %43 : vector<32x128xf32>
    %45 = arith.addf %41, %44 : vector<32x128xf32>
    %46 = vector.extract_strided_slice %34 {offsets = [1, 0], sizes = [1, 128], strides = [1, 1]} : vector<9x128xf32> to vector<1x128xf32>
    %47 = vector.broadcast %46 : vector<1x128xf32> to vector<32x128xf32>
    %48 = arith.mulf %28, %47 : vector<32x128xf32>
    %49 = vector.extract_strided_slice %34 {offsets = [4, 0], sizes = [1, 128], strides = [1, 1]} : vector<9x128xf32> to vector<1x128xf32>
    %50 = vector.broadcast %49 : vector<1x128xf32> to vector<32x128xf32>
    %51 = arith.mulf %0, %50 : vector<32x128xf32>
    %52 = arith.addf %48, %51 : vector<32x128xf32>
    %53 = vector.extract_strided_slice %34 {offsets = [7, 0], sizes = [1, 128], strides = [1, 1]} : vector<9x128xf32> to vector<1x128xf32>
    %54 = vector.broadcast %53 : vector<1x128xf32> to vector<32x128xf32>
    %55 = arith.mulf %33, %54 : vector<32x128xf32>
    %56 = arith.addf %52, %55 : vector<32x128xf32>
    %57 = vector.extract_strided_slice %34 {offsets = [2, 0], sizes = [1, 128], strides = [1, 1]} : vector<9x128xf32> to vector<1x128xf32>
    %58 = vector.broadcast %57 : vector<1x128xf32> to vector<32x128xf32>
    %59 = arith.mulf %28, %58 : vector<32x128xf32>
    %60 = vector.extract_strided_slice %34 {offsets = [5, 0], sizes = [1, 128], strides = [1, 1]} : vector<9x128xf32> to vector<1x128xf32>
    %61 = vector.broadcast %60 : vector<1x128xf32> to vector<32x128xf32>
    %62 = arith.mulf %0, %61 : vector<32x128xf32>
    %63 = arith.addf %59, %62 : vector<32x128xf32>
    %64 = vector.extract_strided_slice %34 {offsets = [8, 0], sizes = [1, 128], strides = [1, 1]} : vector<9x128xf32> to vector<1x128xf32>
    %65 = vector.broadcast %64 : vector<1x128xf32> to vector<32x128xf32>
    %66 = arith.mulf %33, %65 : vector<32x128xf32>
    %67 = arith.addf %63, %66 : vector<32x128xf32>
    %c8_i32 = arith.constant 8 : i32
    %68 = vector.broadcast %c8_i32 : i32 to vector<1x128xi32>
    %69 = arith.cmpi sge, %22, %68 : vector<1x128xi32>
    %c8_i32_9 = arith.constant 8 : i32
    %70 = tpu.dynamic_rotate %45 by %c8_i32_9 dim 1 : vector<32x128xf32>, i32 -> vector<32x128xf32>
    %cst_10 = arith.constant 0.000000e+00 : f32
    %71 = vector.shape_cast %69 : vector<1x128xi1> to vector<1x128xi1>
    %72 = vector.broadcast %71 : vector<1x128xi1> to vector<32x128xi1>
    %73 = vector.broadcast %cst_10 : f32 to vector<32x128xf32>
    %74 = arith.select %72, %70, %73 : vector<32x128xi1>, vector<32x128xf32>
    %c120_i32 = arith.constant 120 : i32
    %75 = vector.broadcast %c120_i32 : i32 to vector<1x128xi32>
    %76 = arith.cmpi slt, %22, %75 : vector<1x128xi32>
    %c120_i32_11 = arith.constant 120 : i32
    %77 = tpu.dynamic_rotate %67 by %c120_i32_11 dim 1 : vector<32x128xf32>, i32 -> vector<32x128xf32>
    %cst_12 = arith.constant 0.000000e+00 : f32
    %78 = vector.shape_cast %76 : vector<1x128xi1> to vector<1x128xi1>
    %79 = vector.broadcast %78 : vector<1x128xi1> to vector<32x128xi1>
    %80 = vector.broadcast %cst_12 : f32 to vector<32x128xf32>
    %81 = arith.select %79, %77, %80 : vector<32x128xi1>, vector<32x128xf32>
    %82 = arith.addf %74, %56 : vector<32x128xf32>
    %83 = arith.addf %82, %81 : vector<32x128xf32>
    %c0_13 = arith.constant 0 : index
    %c0_14 = arith.constant 0 : index
    %84 = vector.load %arg3[%c0_13, %c0_14] : memref<1x128xf32, #tpu.memory_space<vmem>>, vector<1x128xf32>
    %85 = vector.broadcast %84 : vector<1x128xf32> to vector<32x128xf32>
    %86 = arith.addf %83, %85 : vector<32x128xf32>
    %cst_15 = arith.constant 0.000000e+00 : f32
    %87 = vector.broadcast %cst_15 : f32 to vector<32x128xf32>
    %88 = arith.maximumf %86, %87 : vector<32x128xf32>
    %c0_16 = arith.constant 0 : index
    %c0_17 = arith.constant 0 : index
    %89 = vector.load %arg4[%c0_16, %c0_17] : memref<128x256xbf16, #tpu.memory_space<vmem>>, vector<128x256xbf16>
    %90 = arith.truncf %88 : vector<32x128xf32> to vector<32x128xbf16>
    %cst_18 = arith.constant dense<0.000000e+00> : vector<32x256xf32>
    %91 = tpu.matmul %90, %89, %cst_18 {dimension_numbers = #tpu.dot_dimension_numbers<[1], [0], [0], [1], [0, 0, 1, 1], [], []>} : vector<32x128xbf16>, vector<128x256xbf16>, vector<32x256xf32> -> vector<32x256xf32>
    %c0_19 = arith.constant 0 : index
    %c0_20 = arith.constant 0 : index
    %92 = vector.load %arg5[%c0_19, %c0_20] : memref<1x256xf32, #tpu.memory_space<vmem>>, vector<1x256xf32>
    %93 = vector.broadcast %92 : vector<1x256xf32> to vector<32x256xf32>
    %94 = arith.addf %91, %93 : vector<32x256xf32>
    %cst_21 = arith.constant 0.000000e+00 : f32
    %95 = vector.broadcast %cst_21 : f32 to vector<32x256xf32>
    %96 = arith.maximumf %94, %95 : vector<32x256xf32>
    %c1_i32_22 = arith.constant 1 : i32
    %97 = tpu.dynamic_rotate %96 by %c1_i32_22 dim 0 : vector<32x256xf32>, i32 -> vector<32x256xf32>
    %cst_23 = arith.constant 0.000000e+00 : f32
    %98 = vector.shape_cast %19 : vector<32x1xi1> to vector<32x1xi1>
    %99 = vector.broadcast %98 : vector<32x1xi1> to vector<32x256xi1>
    %100 = vector.broadcast %cst_23 : f32 to vector<32x256xf32>
    %101 = arith.select %99, %97, %100 : vector<32x256xi1>, vector<32x256xf32>
    %c31_i32_24 = arith.constant 31 : i32
    %102 = tpu.dynamic_rotate %96 by %c31_i32_24 dim 0 : vector<32x256xf32>, i32 -> vector<32x256xf32>
    %cst_25 = arith.constant 0.000000e+00 : f32
    %103 = vector.shape_cast %21 : vector<32x1xi1> to vector<32x1xi1>
    %104 = vector.broadcast %103 : vector<32x1xi1> to vector<32x256xi1>
    %105 = vector.broadcast %cst_25 : f32 to vector<32x256xf32>
    %106 = arith.select %104, %102, %105 : vector<32x256xi1>, vector<32x256xf32>
    %c0_26 = arith.constant 0 : index
    %c0_27 = arith.constant 0 : index
    %107 = vector.load %arg6[%c0_26, %c0_27] : memref<9x256xf32, #tpu.memory_space<vmem>>, vector<9x256xf32>
    %108 = vector.extract_strided_slice %107 {offsets = [0, 0], sizes = [1, 256], strides = [1, 1]} : vector<9x256xf32> to vector<1x256xf32>
    %109 = vector.broadcast %108 : vector<1x256xf32> to vector<32x256xf32>
    %110 = arith.mulf %101, %109 : vector<32x256xf32>
    %111 = vector.extract_strided_slice %107 {offsets = [3, 0], sizes = [1, 256], strides = [1, 1]} : vector<9x256xf32> to vector<1x256xf32>
    %112 = vector.broadcast %111 : vector<1x256xf32> to vector<32x256xf32>
    %113 = arith.mulf %96, %112 : vector<32x256xf32>
    %114 = arith.addf %110, %113 : vector<32x256xf32>
    %115 = vector.extract_strided_slice %107 {offsets = [6, 0], sizes = [1, 256], strides = [1, 1]} : vector<9x256xf32> to vector<1x256xf32>
    %116 = vector.broadcast %115 : vector<1x256xf32> to vector<32x256xf32>
    %117 = arith.mulf %106, %116 : vector<32x256xf32>
    %118 = arith.addf %114, %117 : vector<32x256xf32>
    %119 = vector.extract_strided_slice %107 {offsets = [1, 0], sizes = [1, 256], strides = [1, 1]} : vector<9x256xf32> to vector<1x256xf32>
    %120 = vector.broadcast %119 : vector<1x256xf32> to vector<32x256xf32>
    %121 = arith.mulf %101, %120 : vector<32x256xf32>
    %122 = vector.extract_strided_slice %107 {offsets = [4, 0], sizes = [1, 256], strides = [1, 1]} : vector<9x256xf32> to vector<1x256xf32>
    %123 = vector.broadcast %122 : vector<1x256xf32> to vector<32x256xf32>
    %124 = arith.mulf %96, %123 : vector<32x256xf32>
    %125 = arith.addf %121, %124 : vector<32x256xf32>
    %126 = vector.extract_strided_slice %107 {offsets = [7, 0], sizes = [1, 256], strides = [1, 1]} : vector<9x256xf32> to vector<1x256xf32>
    %127 = vector.broadcast %126 : vector<1x256xf32> to vector<32x256xf32>
    %128 = arith.mulf %106, %127 : vector<32x256xf32>
    %129 = arith.addf %125, %128 : vector<32x256xf32>
    %130 = vector.extract_strided_slice %107 {offsets = [2, 0], sizes = [1, 256], strides = [1, 1]} : vector<9x256xf32> to vector<1x256xf32>
    %131 = vector.broadcast %130 : vector<1x256xf32> to vector<32x256xf32>
    %132 = arith.mulf %101, %131 : vector<32x256xf32>
    %133 = vector.extract_strided_slice %107 {offsets = [5, 0], sizes = [1, 256], strides = [1, 1]} : vector<9x256xf32> to vector<1x256xf32>
    %134 = vector.broadcast %133 : vector<1x256xf32> to vector<32x256xf32>
    %135 = arith.mulf %96, %134 : vector<32x256xf32>
    %136 = arith.addf %132, %135 : vector<32x256xf32>
    %137 = vector.extract_strided_slice %107 {offsets = [8, 0], sizes = [1, 256], strides = [1, 1]} : vector<9x256xf32> to vector<1x256xf32>
    %138 = vector.broadcast %137 : vector<1x256xf32> to vector<32x256xf32>
    %139 = arith.mulf %106, %138 : vector<32x256xf32>
    %140 = arith.addf %136, %139 : vector<32x256xf32>
    %c16_i32_28 = arith.constant 16 : i32
    %141 = vector.broadcast %c16_i32_28 : i32 to vector<1x256xi32>
    %142 = arith.cmpi sge, %23, %141 : vector<1x256xi32>
    %c16_i32_29 = arith.constant 16 : i32
    %143 = tpu.dynamic_rotate %118 by %c16_i32_29 dim 1 : vector<32x256xf32>, i32 -> vector<32x256xf32>
    %cst_30 = arith.constant 0.000000e+00 : f32
    %144 = vector.shape_cast %142 : vector<1x256xi1> to vector<1x256xi1>
    %145 = vector.broadcast %144 : vector<1x256xi1> to vector<32x256xi1>
    %146 = vector.broadcast %cst_30 : f32 to vector<32x256xf32>
    %147 = arith.select %145, %143, %146 : vector<32x256xi1>, vector<32x256xf32>
    %c240_i32 = arith.constant 240 : i32
    %148 = vector.broadcast %c240_i32 : i32 to vector<1x256xi32>
    %149 = arith.cmpi slt, %23, %148 : vector<1x256xi32>
    %c240_i32_31 = arith.constant 240 : i32
    %150 = tpu.dynamic_rotate %140 by %c240_i32_31 dim 1 : vector<32x256xf32>, i32 -> vector<32x256xf32>
    %cst_32 = arith.constant 0.000000e+00 : f32
    %151 = vector.shape_cast %149 : vector<1x256xi1> to vector<1x256xi1>
    %152 = vector.broadcast %151 : vector<1x256xi1> to vector<32x256xi1>
    %153 = vector.broadcast %cst_32 : f32 to vector<32x256xf32>
    %154 = arith.select %152, %150, %153 : vector<32x256xi1>, vector<32x256xf32>
    %155 = arith.addf %147, %129 : vector<32x256xf32>
    %156 = arith.addf %155, %154 : vector<32x256xf32>
    %c0_33 = arith.constant 0 : index
    %c0_34 = arith.constant 0 : index
    %157 = vector.load %arg7[%c0_33, %c0_34] : memref<1x256xf32, #tpu.memory_space<vmem>>, vector<1x256xf32>
    %158 = vector.broadcast %157 : vector<1x256xf32> to vector<32x256xf32>
    %159 = arith.addf %156, %158 : vector<32x256xf32>
    %cst_35 = arith.constant 0.000000e+00 : f32
    %160 = vector.broadcast %cst_35 : f32 to vector<32x256xf32>
    %161 = arith.maximumf %159, %160 : vector<32x256xf32>
    %c0_36 = arith.constant 0 : index
    %c0_37 = arith.constant 0 : index
    %162 = vector.load %arg8[%c0_36, %c0_37] : memref<256x256xbf16, #tpu.memory_space<vmem>>, vector<256x256xbf16>
    %163 = arith.truncf %161 : vector<32x256xf32> to vector<32x256xbf16>
    %cst_38 = arith.constant dense<0.000000e+00> : vector<32x256xf32>
    %164 = tpu.matmul %163, %162, %cst_38 {dimension_numbers = #tpu.dot_dimension_numbers<[1], [0], [0], [1], [0, 0, 1, 1], [], []>} : vector<32x256xbf16>, vector<256x256xbf16>, vector<32x256xf32> -> vector<32x256xf32>
    %c0_39 = arith.constant 0 : index
    %c0_40 = arith.constant 0 : index
    %165 = vector.load %arg9[%c0_39, %c0_40] : memref<1x256xf32, #tpu.memory_space<vmem>>, vector<1x256xf32>
    %166 = vector.broadcast %165 : vector<1x256xf32> to vector<32x256xf32>
    %167 = arith.addf %164, %166 : vector<32x256xf32>
    %c0_41 = arith.constant 0 : index
    %c0_42 = arith.constant 0 : index
    %168 = vector.load %arg10[%c0_41, %c0_42] : memref<128x256xbf16, #tpu.memory_space<vmem>>, vector<128x256xbf16>
    %169 = arith.truncf %0 : vector<32x128xf32> to vector<32x128xbf16>
    %cst_43 = arith.constant dense<0.000000e+00> : vector<32x256xf32>
    %170 = tpu.matmul %169, %168, %cst_43 {dimension_numbers = #tpu.dot_dimension_numbers<[1], [0], [0], [1], [0, 0, 1, 1], [], []>} : vector<32x128xbf16>, vector<128x256xbf16>, vector<32x256xf32> -> vector<32x256xf32>
    %c0_44 = arith.constant 0 : index
    %c0_45 = arith.constant 0 : index
    %171 = vector.load %arg11[%c0_44, %c0_45] : memref<1x256xf32, #tpu.memory_space<vmem>>, vector<1x256xf32>
    %172 = vector.broadcast %171 : vector<1x256xf32> to vector<32x256xf32>
    %173 = arith.addf %170, %172 : vector<32x256xf32>
    %174 = arith.addf %167, %173 : vector<32x256xf32>
    %cst_46 = arith.constant 0.000000e+00 : f32
    %175 = vector.broadcast %cst_46 : f32 to vector<32x256xf32>
    %176 = arith.maximumf %174, %175 : vector<32x256xf32>
    %c0_47 = arith.constant 0 : index
    %c0_48 = arith.constant 0 : index
    %177 = vector.load %arg12[%c0_47, %c0_48] : memref<32x256xf32, #tpu.memory_space<vmem>>, vector<32x256xf32>
    tpu.vector_store %arg12[%c0_47, %c0_48], %176 {strides = array<i32>} : memref<32x256xf32, #tpu.memory_space<vmem>>, vector<32x256xf32>,
    return
  }
  func.func @transform_0(%arg0: i32) -> (i32, i32) {
    %c0_i32 = arith.constant 0 : i32
    %c0_i32_0 = arith.constant 0 : i32
    return %arg0, %c0_i32 : i32, i32
  }
  func.func @transform_1(%arg0: i32) -> (i32, i32) {
    %c0_i32 = arith.constant 0 : i32
    %c0_i32_0 = arith.constant 0 : i32
    %c0_i32_1 = arith.constant 0 : i32
    return %c0_i32, %c0_i32_0 : i32, i32
  }
  func.func @transform_2(%arg0: i32) -> (i32, i32) {
    %c0_i32 = arith.constant 0 : i32
    %c0_i32_0 = arith.constant 0 : i32
    %c0_i32_1 = arith.constant 0 : i32
    return %c0_i32, %c0_i32_0 : i32, i32
  }
  func.func @transform_3(%arg0: i32) -> (i32, i32) {
    %c0_i32 = arith.constant 0 : i32
    %c0_i32_0 = arith.constant 0 : i32
    %c0_i32_1 = arith.constant 0 : i32
    return %c0_i32, %c0_i32_0 : i32, i32
  }
  func.func @transform_4(%arg0: i32) -> (i32, i32) {
    %c0_i32 = arith.constant 0 : i32
    %c0_i32_0 = arith.constant 0 : i32
    %c0_i32_1 = arith.constant 0 : i32
    return %c0_i32, %c0_i32_0 : i32, i32
  }
  func.func @transform_5(%arg0: i32) -> (i32, i32) {
    %c0_i32 = arith.constant 0 : i32
    %c0_i32_0 = arith.constant 0 : i32
    %c0_i32_1 = arith.constant 0 : i32
    return %c0_i32, %c0_i32_0 : i32, i32
  }
  func.func @transform_6(%arg0: i32) -> (i32, i32) {
    %c0_i32 = arith.constant 0 : i32
    %c0_i32_0 = arith.constant 0 : i32
    %c0_i32_1 = arith.constant 0 : i32
    return %c0_i32, %c0_i32_0 : i32, i32
  }
  func.func @transform_7(%arg0: i32) -> (i32, i32) {
    %c0_i32 = arith.constant 0 : i32
    %c0_i32_0 = arith.constant 0 : i32
    %c0_i32_1 = arith.constant 0 : i32
    return %c0_i32, %c0_i32_0 : i32, i32
  }
  func.func @transform_8(%arg0: i32) -> (i32, i32) {
    %c0_i32 = arith.constant 0 : i32
    %c0_i32_0 = arith.constant 0 : i32
    %c0_i32_1 = arith.constant 0 : i32
    return %c0_i32, %c0_i32_0 : i32, i32
  }
  func.func @transform_9(%arg0: i32) -> (i32, i32) {
    %c0_i32 = arith.constant 0 : i32
    %c0_i32_0 = arith.constant 0 : i32
    %c0_i32_1 = arith.constant 0 : i32
    return %c0_i32, %c0_i32_0 : i32, i32
  }
  func.func @transform_10(%arg0: i32) -> (i32, i32) {
    %c0_i32 = arith.constant 0 : i32
    %c0_i32_0 = arith.constant 0 : i32
    %c0_i32_1 = arith.constant 0 : i32
    return %c0_i32, %c0_i32_0 : i32, i32
  }
  func.func @transform_11(%arg0: i32) -> (i32, i32) {
    %c0_i32 = arith.constant 0 : i32
    %c0_i32_0 = arith.constant 0 : i32
    return %arg0, %c0_i32 : i32, i32
  }
}

</mosaic_0001>

<bundles_post_ra>
// kernel: tpu_custom_call.1
= control target key start
LH: loop header
LB: loop body
LE: loop exit
PB: predicated region body
PF: predicated region fallthrough
CT: control target
= control target key end

     0   :  { %16 = vsyncpa [#allocation3], 0  ;;  %s2633_s0 = inlined_call_operand.hbm [shape: f32[32,128], index: 0, kind: input, shape index: {}]   ;;  %s2634_s1 = inlined_call_operand.hbm [shape: f32[9,128], index: 1, kind: input, shape index: {}]   ;;  %s2635_s2 = inlined_call_operand.vmem [shape: f32[1,128], index: 2, kind: input, shape index: {}]   ;;  %s2636_s3 = inlined_call_operand.hbm [shape: bf16[128,256], index: 3, kind: input, shape index: {}]   ;;  %s2637_s4 = inlined_call_operand.vmem [shape: f32[1,256], index: 4, kind: input, shape index: {}]   ;;  %s2638_s5 = inlined_call_operand.hbm [shape: f32[9,256], index: 5, kind: input, shape index: {}]   ;;  %s2639_s6 = inlined_call_operand.vmem [shape: f32[1,256], index: 6, kind: input, shape index: {}]   ;;  %s2640_s7 = inlined_call_operand.hbm [shape: bf16[256,256], index: 7, kind: input, shape index: {}]   ;;  %s2641_s8 = inlined_call_operand.vmem [shape: f32[1,256], index: 8, kind: input, shape index: {}]   ;;  %s2642_s9 = inlined_call_operand.hbm [shape: bf16[128,256], index: 9, kind: input, shape index: {}]   ;;  %s2643_s10 = inlined_call_operand.vmem [shape: f32[1,256], index: 10, kind: input, shape index: {}]   ;;  %s2644_s11 = inlined_call_operand.hbm [shape: f32[32,256], index: 11, kind: output, shape index: {}]  }
   0x1   :  { %17 = vsyncpa [#allocation6], 0 }
   0x2   :  { %18 = vsyncpa [#allocation9], 0 }
   0x3   :  { %19 = vsyncpa [#allocation12], 0 }
   0x4   :  { %20 = vsyncpa [#allocation4], 0  ;;  %s1758_s17 = smov [#allocation5]   ;;  %s1759_s19 = smov [#allocation8]  }
   0x5   :  { %s38_s18 = sshll.u32 %s1758_s17, 4  ;;  %s66_s20 = sshll.u32 %s1759_s19, 4  ;;  %s39_s18 = int_to_ptr.vmem [resolvable:$true] %s38_s18  ;;  %s1832_s20 = int_to_ptr.vmem [resolvable:$true] %s66_s20 }
   0x6   :  { %s1594_s23 = scalar_lea.hbm %s2634_s1, 256 }
   0x7   :  { %p1595_p0 = scmp.ne.s32.totalorder %s2634_s1, %s1594_s23  ;;  %p1598_p1 = scmp.lt.u32.totalorder %s1594_s23, %s2634_s1 }
   0x9   :  { %p1600_p2 = pnand %p1598_p1, %p1595_p0 }
   0xb   :  { %1603 = shalt.err (!%p1600_p2)
}
   0xc   :  { %s1604_s28 = scalar_lea.vmem %s39_s18, 256  ;;  %p1609_p4 = scmp.lt.s32.totalorder %s39_s18, %s39_s18 }
   0xd   :  { %p1605_p3 = scmp.ne.s32.totalorder %s39_s18, %s1604_s28  ;;  %p1610_p5 = scmp.lt.s32.totalorder %s1604_s28, %s1604_s28 }
   0xf   :  { %p1611_p6 = por %p1610_p5, %p1609_p4 }
  0x11   :  { %p1612_p7 = pnand %p1611_p6, %p1605_p3 }
  0x13   :  { %1615 = shalt.err (!%p1612_p7)
}
  0x14   :  { %s1760_s29 = smov 128   ;;  %s1761_s30 = smov 8  }
  0x15   :  { %44 = dma.hbm_to_vmem [thread:$0]  %s2634_s1, 256, %s39_s18, [#allocation6], %s1760_s29, %s1760_s29, %s1761_s30  }
  0x16   :  { %s1616_s16 = scalar_lea.hbm %s2638_s5, 512 }
  0x17   :  { %p1617_p8 = scmp.ne.s32.totalorder %s2638_s5, %s1616_s16  ;;  %p1620_p9 = scmp.lt.u32.totalorder %s1616_s16, %s2638_s5 }
  0x19   :  { %p1622_p10 = pnand %p1620_p9, %p1617_p8 }
  0x1b   :  { %1625 = shalt.err (!%p1622_p10)
}
  0x1c   :  { %s1626_s23 = scalar_lea.vmem %s1832_s20, 512  ;;  %p1631_p12 = scmp.lt.s32.totalorder %s1832_s20, %s1832_s20 }
  0x1d   :  { %p1627_p11 = scmp.ne.s32.totalorder %s1832_s20, %s1626_s23  ;;  %p1632_p13 = scmp.lt.s32.totalorder %s1626_s23, %s1626_s23 }
  0x1f   :  { %p1633_p0 = por %p1632_p13, %p1631_p12 }
  0x21   :  { %p1634_p1 = pnand %p1633_p0, %p1627_p11 }
  0x23   :  { %1637 = shalt.err (!%p1634_p1)
}
  0x24   :  { %s1762_s1 = smov 256   ;;  %s1763_s18 = smov 16  }
  0x25   :  { %72 = dma.hbm_to_vmem [thread:$0]  %s2638_s5, 512, %s1832_s20, [#allocation9], %s1762_s1, %s1762_s1, %s1763_s18  }
  0x26   :  { %s1764_s26 = smov [#allocation2]   ;;  %s1765_s28 = smov [#allocation7]  }
  0x27   :  { %s26_s27 = sshll.u32 %s1764_s26, 4  ;;  %s52_s12 = sshll.u32 %s1765_s28, 4  ;;  %s27_s27 = int_to_ptr.vmem [resolvable:$true] %s26_s27  ;;  %s1869_s12 = int_to_ptr.vmem [resolvable:$true] %s52_s12 }
  0x28   :  { %s1638_s15 = scalar_lea.hbm %s2633_s0, 512 }
  0x29   :  { %p1639_p2 = scmp.ne.s32.totalorder %s2633_s0, %s1638_s15  ;;  %p1642_p3 = scmp.lt.u32.totalorder %s1638_s15, %s2633_s0 }
  0x2b   :  { %p1644_p4 = pnand %p1642_p3, %p1639_p2 }
  0x2d   :  { %1647 = shalt.err (!%p1644_p4)
}
  0x2e   :  { %s1648_s5 = scalar_lea.vmem %s27_s27, 512  ;;  %p1653_p6 = scmp.lt.s32.totalorder %s27_s27, %s27_s27 }
  0x2f   :  { %p1649_p5 = scmp.ne.s32.totalorder %s27_s27, %s1648_s5  ;;  %p1654_p7 = scmp.lt.s32.totalorder %s1648_s5, %s1648_s5 }
  0x31   :  { %p1655_p8 = por %p1654_p7, %p1653_p6 }
  0x33   :  { %p1656_p9 = pnand %p1655_p8, %p1649_p5 }
  0x35   :  { %1659 = shalt.err (!%p1656_p9)
}
  0x36   :  { %32 = dma.hbm_to_vmem [thread:$0]  %s2633_s0, 512, %s27_s27, [#allocation3], %s1760_s29, %s1760_s29, %s1761_s30  }
  0x37   :  { %s1660_s25 = scalar_lea.hbm %s2636_s3, 2048 }
  0x38   :  { %p1661_p10 = scmp.ne.s32.totalorder %s2636_s3, %s1660_s25  ;;  %p1664_p11 = scmp.lt.u32.totalorder %s1660_s25, %s2636_s3 }
  0x3a   :  { %p1666_p12 = pnand %p1664_p11, %p1661_p10 }
  0x3c   :  { %1669 = shalt.err (!%p1666_p12)
}
  0x3d   :  { %s1670_s15 = scalar_lea.vmem %s1869_s12, 2048  ;;  %p1675_p0 = scmp.lt.s32.totalorder %s1869_s12, %s1869_s12 }
  0x3e   :  { %p1671_p13 = scmp.ne.s32.totalorder %s1869_s12, %s1670_s15  ;;  %p1676_p1 = scmp.lt.s32.totalorder %s1670_s15, %s1670_s15 }
  0x40   :  { %p1677_p2 = por %p1676_p1, %p1675_p0 }
  0x42   :  { %p1678_p3 = pnand %p1677_p2, %p1671_p13 }
  0x44   :  { %1681 = shalt.err (!%p1678_p3)
}
  0x45   :  { %58 = dma.hbm_to_vmem [thread:$0]  %s2636_s3, 2048, %s1869_s12, [#allocation6], %s1760_s29, %s1760_s29, %s1761_s30  }
  0x46   :  { %s1766_s16 = smov [#allocation10]   ;;  %s1767_s19 = smov [#allocation11]  }
  0x47   :  { %s80_s17 = sshll.u32 %s1766_s16, 4  ;;  %s94_s21 = sshll.u32 %s1767_s19, 4  ;;  %s81_s17 = int_to_ptr.vmem [resolvable:$true] %s80_s17  ;;  %s1906_s21 = int_to_ptr.vmem [resolvable:$true] %s94_s21 }
  0x48   :  { %s1682_s22 = scalar_lea.hbm %s2640_s7, 4096 }
  0x49   :  { %p1683_p4 = scmp.ne.s32.totalorder %s2640_s7, %s1682_s22  ;;  %p1686_p5 = scmp.lt.u32.totalorder %s1682_s22, %s2640_s7 }
  0x4b   :  { %p1688_p6 = pnand %p1686_p5, %p1683_p4 }
  0x4d   :  { %1691 = shalt.err (!%p1688_p6)
}
  0x4e   :  { %s1692_s3 = scalar_lea.vmem %s81_s17, 4096  ;;  %p1697_p8 = scmp.lt.s32.totalorder %s81_s17, %s81_s17 }
  0x4f   :  { %p1693_p7 = scmp.ne.s32.totalorder %s81_s17, %s1692_s3  ;;  %p1698_p9 = scmp.lt.s32.totalorder %s1692_s3, %s1692_s3 }
  0x51   :  { %p1699_p10 = por %p1698_p9, %p1697_p8 }
  0x53   :  { %p1700_p11 = pnand %p1699_p10, %p1693_p7 }
  0x55   :  { %1703 = shalt.err (!%p1700_p11)
}
  0x56   :  { %86 = dma.hbm_to_vmem [thread:$0]  %s2640_s7, 4096, %s81_s17, [#allocation9], %s1760_s29, %s1760_s29, %s1761_s30  }
  0x57   :  { %s1704_s15 = scalar_lea.hbm %s2642_s9, 2048 }
  0x58   :  { %p1705_p12 = scmp.ne.s32.totalorder %s2642_s9, %s1704_s15  ;;  %p1708_p13 = scmp.lt.u32.totalorder %s1704_s15, %s2642_s9 }
  0x5a   :  { %p1710_p0 = pnand %p1708_p13, %p1705_p12 }
  0x5c   :  { %1713 = shalt.err (!%p1710_p0)
}
  0x5d   :  { %s1714_s5 = scalar_lea.vmem %s1906_s21, 2048  ;;  %p1719_p2 = scmp.lt.s32.totalorder %s1906_s21, %s1906_s21 }
  0x5e   :  { %p1715_p1 = scmp.ne.s32.totalorder %s1906_s21, %s1714_s5  ;;  %p1720_p3 = scmp.lt.s32.totalorder %s1714_s5, %s1714_s5 }
  0x60   :  { %p1721_p4 = por %p1720_p3, %p1719_p2 }
  0x62   :  { %p1722_p5 = pnand %p1721_p4, %p1715_p1 }
  0x64   :  { %1725 = shalt.err (!%p1722_p5)
}
  0x65   :  { %100 = dma.hbm_to_vmem [thread:$0]  %s2642_s9, 2048, %s1906_s21, [#allocation12], %s1760_s29, %s1760_s29, %s1761_s30  }
  0x66   :  { %1748 = dma.done.wait [#allocation3], 512  }
  0x67   :  { %1749 = vsyncadd [#allocation3], 4294966784 }
  0x68   :  { %1750 = dma.done.wait [#allocation6], 2304  }
  0x69   :  { %1751 = vsyncadd [#allocation6], 4294964992 }
  0x6a   :  { %1752 = dma.done.wait [#allocation9], 4608  }
  0x6b   :  { %1753 = vsyncadd [#allocation9], 4294962688 }
  0x6c   :  { %1754 = dma.done.wait [#allocation12], 2048  }
  0x6d   :  { %1755 = vsyncadd [#allocation12], 4294965248  ;;  %v126_v0 = vlaneseq  ;;  %v1968_v11 = vld [vmem:[#allocation2] sm:$0xff]  ;;  %v1970_v12 = vld [vmem:[#allocation2 + $0x8] sm:$0xff]  ;;  %s1768_s9 = smov 120  }
  0x6e   :  { %v1972_v13 = vld [vmem:[#allocation2 + $0x10] sm:$0xff]  ;;  %v190_v18 = vrot.slane %v1968_v11, 7  ;;  %v191_v19 = vrot.slane %v1970_v12, 7  ;;  %v212_v20 = vrot.slane %v1970_v12, 1  ;;  %v1991_v21 = vld [vmem:[#allocation5] sm:$0xff]  ;;  %v1993_v22 = vld [vmem:[#allocation2 + $0x18] sm:$0xff] }
  0x6f   :  { %v1944_v1 = vshrl.u32 %v126_v0, 7  ;;  %v213_v23 = vrot.slane %v1972_v13, 1  ;;  %v1996_v24 = vld [vmem:[#allocation5 + $0x8] ss:$0 sm:$0xff]  ;;  %v193_v27 = vrot.slane %v1993_v22, 7  ;;  %v211_v29 = vrot.slane %v1968_v11, 1 }
  0x70   :  { %v1494_v32 = vld [vmem:[#allocation7 + $0x4] ss:$8 sps:$4 sm:$0xff]   ;;  %v1496_v33 = vld [vmem:[#allocation7] ss:$8 sps:$4 sm:$0xff]   ;;  %v1497_v38 = vld [vmem:[#allocation7 + $0x14] ss:$8 sps:$4 sm:$0xff]  }
  0x71   :  { %v128_v2 = vadd.s32 8, %v1944_v1  ;;  %vm194_vm0 = vcmp.lt.s32.totalorder %v1944_v1, 1  ;;  %vm215_vm1 = vcmp.lt.s32.totalorder %v1944_v1, 7  ;;  %v1950_v3 = vsub.s32 2, %v1944_v1  ;;  %493 = vmatprep.subr.bf16.mxu0 %v1494_v32  ;;  %v1499_v47 = vld [vmem:[#allocation7 + $0x10] ss:$8 sps:$4 sm:$0xff]  }
  0x72   :  { %v1953_v4 = vsub.s32 5, %v1944_v1  ;;  %v135_v5 = vand.u32 15, %v1944_v1  ;;  %v1957_v6 = vsub.s32 0, %v1944_v1  ;;  %v1960_v8 = vsub.s32 3, %v1944_v1  ;;  %494 = vmatpush1.bf16.msra.mxu0 %v1496_v33  ;;  %v1500_v52 = vld [vmem:[#allocation7 + $0x24] ss:$8 sps:$4 sm:$0xff]  }
  0x73   :  { %v142_v7 = vand.u32 15, %v128_v2  ;;  %v1963_v9 = vsub.s32 6, %v1944_v1  ;;  %v1966_v10 = vadd.s32 24, %v1944_v1  ;;  %v1979_v15 = vadd.s32 16, %v1944_v1  ;;  %495 = vmatprep.subr.bf16.mxu0 %v1497_v38  ;;  %v1503_v32 = vld [vmem:[#allocation7 + $0x34] ss:$8 sps:$4 sm:$0xff]  }
  0x74   :  { %2661 = vst [vmem:[#allocation19_spill] sm:$0xff] %v1957_v6  ;;  %vm1974_vm2 = vcmp.gt.s32.totalorder %v135_v5, 0  ;;  %v1982_v16 = vsub.s32 1, %v1944_v1  ;;  %v2000_v25 = vrot.slane %v1991_v21, %v1950_v3  ;;  %v2004_v26 = vrot.slane %v1991_v21, %v1953_v4  ;;  %v1502_v5 = vld [vmem:[#allocation7 + $0x20] ss:$8 sps:$4 sm:$0xff]  }
  0x75   :  { %vm1984_vm3 = vcmp.lt.s32.totalorder %v142_v7, 15  ;;  %v2011_v28 = vsel %vm194_vm0, %v190_v18, %v191_v19  ;;  %v2016_v30 = vrot.slane %v1991_v21, %v1957_v6  ;;  %v245_v31 = vrot.slane %v1991_v21, %v1960_v8 }
  0x76   :  { %2664 = vst [vmem:[#allocation20_spill] sm:$0xff] %v1982_v16  ;;  %v217_v34 = vsel %vm215_vm1, %v212_v20, %v213_v23  ;;  %v303_v35 = vmul.f32 %v2000_v25, %v2011_v28  ;;  %v311_v36 = vmul.f32 %v2004_v26, %v1970_v12  ;;  %v198_v37 = vsel %vm194_vm0, %v193_v27, %v190_v18 }
  0x77   :  { %v2032_v39 = vsel %vm1984_vm3, %v217_v34, 0.0  ;;  %v2036_v40 = vsel %vm1974_vm2, %v198_v37, 0.0  ;;  %v2040_v41 = vsel %vm215_vm1, %v211_v29, %v212_v20  ;;  %v246_v42 = vmul.f32 %v245_v31, %v1968_v11  ;;  %496 = vmatpush1.bf16.msra.mxu0 %v1499_v47  ;;  %v1505_v37 = vld [vmem:[#allocation7 + $0x30] ss:$8 sps:$4 sm:$0xff]  }
  0x78   :  { %v315_v43 = vadd.f32 %v311_v36, %v303_v35  ;;  %v323_v44 = vmul.f32 %v1996_v24, %v2032_v39  ;;  %v238_v45 = vmul.f32 %v2016_v30, %v2036_v40  ;;  %v257_v46 = vrot.slane %v1991_v21, %v1963_v9  ;;  %497 = vmatprep.subr.bf16.mxu0 %v1500_v52  ;;  %v1508_v52 = vld [vmem:[#allocation7 + $0x40] ss:$8 sps:$4 sm:$0xff]  }
  0x79   :  { %v302_v48 = vmul.f32 %v2000_v25, %v2036_v40  ;;  %v310_v49 = vmul.f32 %v2004_v26, %v1968_v11  ;;  %v322_v50 = vmul.f32 %v1996_v24, %v2040_v41  ;;  %v239_v51 = vmul.f32 %v2016_v30, %v2011_v28 }
  0x7a   :  { %v327_v53 = vadd.f32 %v323_v44, %v315_v43  ;;  %v250_v54 = vadd.f32 %v246_v42, %v238_v45  ;;  %v258_v55 = vmul.f32 %v257_v46, %v2040_v41  ;;  %v247_v56 = vmul.f32 %v245_v31, %v1970_v12  ;;  %v1506_v42 = vld [vmem:[#allocation7 + $0x44] ss:$8 sps:$4 sm:$0xff]  }
  0x7b   :  { %v314_v57 = vadd.f32 %v310_v49, %v302_v48  ;;  %v259_v58 = vmul.f32 %v257_v46, %v2032_v39  ;;  %v156_v59 = vand.u32 15, %v1966_v10  ;;  %v192_v60 = vrot.slane %v1972_v13, 7  ;;  %498 = vmatpush1.bf16.msra.mxu0 %v1502_v5 }
  0x7c   :  { %348 = vrot.lane.b32.xlu1 %v327_v53, %s1768_s9  ;;  %v262_v61 = vadd.f32 %v258_v55, %v250_v54  ;;  %v251_v62 = vadd.f32 %v247_v56, %v239_v51  ;;  %v214_v63 = vrot.slane %v1993_v22, 1  ;;  %v249_v2 = vmul.f32 %v245_v31, %v1993_v22  ;;  %499 = vmatprep.subr.bf16.mxu0 %v1503_v32  ;;  %v1509_v56 = vld [vmem:[#allocation7 + $0x54] ss:$8 sps:$4 sm:$0xff]  }
  0x7d   :  { %v326_v7 = vadd.f32 %v322_v50, %v314_v57  ;;  %vm2065_vm4 = vcmp.lt.s32.totalorder %v156_v59, 15  ;;  %v195_v10 = vsel %vm194_vm0, %v192_v60, %v193_v27  ;;  %v149_v20 = vand.u32 15, %v1979_v15 }
  0x7e   :  { %331 = vrot.lane.b32.xlu0 %v262_v61, %s1761_s30  ;;  %v263_v33 = vadd.f32 %v259_v58, %v251_v62  ;;  %v219_v34 = vsel %vm215_vm1, %v214_v63, %v211_v29  ;;  %v241_v35 = vmul.f32 %v2016_v30, %v195_v10  ;;  %v196_v36 = vsel %vm194_vm0, %v191_v19, %v192_v60 }
  0x7f   :  { %v231_v27 = vsel %vm2065_vm4, %v219_v34, 0.0  ;;  %vm2082_vm5 = vcmp.gt.s32.totalorder %v149_v20, 0  ;;  %v216_v29 = vsel %vm215_vm1, %v213_v23, %v214_v63  ;;  %v248_v38 = vmul.f32 %v245_v31, %v1972_v13  ;;  %500 = vmatpush1.bf16.msra.mxu0 %v1505_v37  ;;  %v1511_v63 = vld [vmem:[#allocation7 + $0x50] ss:$8 sps:$4 sm:$0xff]  }
  0x80   :  { %346 = vrot.lane.b32.xlu1 %v326_v7, %s1768_s9  ;;  %v253_v43 = vadd.f32 %v249_v2, %v241_v35  ;;  %v261_v19 = vmul.f32 %v257_v46, %v231_v27  ;;  %v209_v44 = vsel %vm2082_vm5, %v196_v36, 0.0  ;;  %v260_v45 = vmul.f32 %v257_v46, %v216_v29  ;;  %501 = vmatprep.subr.bf16.mxu0 %v1506_v42 }
  0x81   :  { %v240_v47 = vmul.f32 %v2016_v30, %v209_v44  ;;  %v305_v48 = vmul.f32 %v2000_v25, %v195_v10  ;;  %v313_v49 = vmul.f32 %v2004_v26, %v1993_v22  ;;  %v325_v23 = vmul.f32 %v1996_v24, %v231_v27 }
  0x82   :  { %333 = vrot.lane.b32.xlu0 %v263_v33, %s1761_s30  ;;  %v265_v31 = vadd.f32 %v261_v19, %v253_v43  ;;  %v304_v50 = vmul.f32 %v2000_v25, %v209_v44  ;;  %v312_v51 = vmul.f32 %v2004_v26, %v1972_v13  ;;  %v324_v46 = vmul.f32 %v1996_v24, %v216_v29 }
  0x83   :  { %v252_v30 = vadd.f32 %v248_v38, %v240_v47  ;;  %v317_v53 = vadd.f32 %v313_v49, %v305_v48  ;;  %v269_v54 = vrot.slane %v1991_v21, %v1982_v16  ;;  %v2107_v55 = vsub.s32 4, %v1944_v1  ;;  %502 = vmatpush1.bf16.msra.mxu0 %v1508_v52 }
  0x84   :  { %337 = vrot.lane.b32.xlu1 %v265_v31, %s1761_s30  ;;  %v316_v57 = vadd.f32 %v312_v51, %v304_v50  ;;  %v2111_v25 = vsub.s32 7, %v1944_v1  ;;  %v2645_v5 = vmov 0   ;;  %503 = vmatprep.subr.bf16.mxu0 %v1509_v56  ;;  %v2130_v19 = vand.u32 127, %v126_v0  ;;  %v1389_v0 = vld [vmem:[%s2635_s2] ss:$0 sm:$0xff] }
  0x85   :  { %v264_v26 = vadd.f32 %v260_v45, %v252_v30  ;;  %v329_v58 = vadd.f32 %v325_v23, %v317_v53  ;;  %v270_v24 = vmul.f32 %v269_v54, %v2036_v40  ;;  %v277_v59 = vrot.slane %v1991_v21, %v2107_v55  ;;  %525 = vmatprep.mubr.bf16.mxu0 %v2645_v5 }
  0x86   :  { %v328_v60 = vadd.f32 %v324_v46, %v316_v57  ;;  %v289_v61 = vrot.slane %v1991_v21, %v2111_v25  ;;  %v271_v62 = vmul.f32 %v269_v54, %v2011_v28  ;;  %v273_v2 = vmul.f32 %v269_v54, %v195_v10  ;;  %v1512_v10 = vld [vmem:[#allocation7 + $0x64] ss:$8 sps:$4 sm:$0xff]   ;;  %2671 = vst [vmem:[#allocation21_spill] sm:$0xff] %v2130_v19 }
  0x87   :  { %335 = vrot.lane.b32.xlu0 %v264_v26, %s1761_s30  ;;  %v278_v7 = vmul.f32 %v277_v59, %v1968_v11  ;;  %v279_v40 = vmul.f32 %v277_v59, %v1970_v12  ;;  %v281_v20 = vmul.f32 %v277_v59, %v1993_v22  ;;  %v272_v32 = vmul.f32 %v269_v54, %v209_v44  ;;  %v1514_v12 = vld [vmem:[#allocation7 + $0x60] ss:$8 sps:$4 sm:$0xff]  }
  0x88   :  { %352 = vrot.lane.b32.xlu1 %v329_v58, %s1768_s9  ;;  %v290_v21 = vmul.f32 %v289_v61, %v2040_v41  ;;  %v291_v28 = vmul.f32 %v289_v61, %v2032_v39  ;;  %v293_v33 = vmul.f32 %v289_v61, %v231_v27  ;;  %v280_v11 = vmul.f32 %v277_v59, %v1972_v13  ;;  %v1515_v41 = vld [vmem:[#allocation7 + $0x74] ss:$8 sps:$4 sm:$0xff]   ;;  %v1517_v27 = vld [vmem:[#allocation7 + $0x70] ss:$8 sps:$4 sm:$0xff]  }
  0x89   :  { %v282_v34 = vadd.f32 %v278_v7, %v270_v24  ;;  %v283_v35 = vadd.f32 %v279_v40, %v271_v62  ;;  %v285_v36 = vadd.f32 %v281_v20, %v273_v2  ;;  %v292_v37 = vmul.f32 %v289_v61, %v216_v29  ;;  %504 = vmatpush1.bf16.msra.mxu0 %v1511_v63 }
  0x8a   :  { %v284_v43 = vadd.f32 %v280_v11, %v272_v32  ;;  %505 = vmatprep.subr.bf16.mxu0 %v1512_v10  ;;  %vm330_vm6 = vcmp.ge.s32.totalorder %v2130_v19, 8  ;;  %vm345_vm7 = vcmp.lt.s32.totalorder %v2130_v19, 120  ;;  %v1524_v11 = vld [vmem:[#allocation10 + $0x24] ss:$8 sps:$4 sm:$0xff]   ;;  %v1556_v19 = vld [vmem:[#allocation10 + $0xa0] ss:$8 sps:$4 sm:$0xff]  }
  0x8b   :  { %350 = vrot.lane.b32.xlu0 %v328_v60, %s1768_s9  ;;  %v294_v22 = vadd.f32 %v290_v21, %v282_v34  ;;  %v295_v38 = vadd.f32 %v291_v28, %v283_v35  ;;  %v297_v42 = vadd.f32 %v293_v33, %v285_v36  ;;  %v1518_v33 = vld [vmem:[#allocation10 + $0x4] ss:$8 sps:$4 sm:$0xff]   ;;  %v1520_v34 = vld [vmem:[#allocation10] ss:$8 sps:$4 sm:$0xff]   ;;  %v1521_v35 = vld [vmem:[#allocation10 + $0x14] ss:$8 sps:$4 sm:$0xff]  }
  0x8c   :  { %v296_v39 = vadd.f32 %v292_v37, %v284_v43  ;;  %1128 = vmatprep.subr.bf16.mxu1 %v1518_v33  ;;  %v1523_v36 = vld [vmem:[#allocation10 + $0x10] ss:$8 sps:$4 sm:$0xff]   ;;  %v1526_v37 = vld [vmem:[#allocation10 + $0x20] ss:$8 sps:$4 sm:$0xff]   ;;  %v1533_v43 = vld [vmem:[#allocation10 + $0x54] ss:$8 sps:$4 sm:$0xff]  }
  0x8d   :  { %506 = vmatpush1.bf16.msra.mxu0 %v1514_v12  ;;  %1129 = vmatpush1.bf16.msra.mxu1 %v1520_v34  ;;  %v1527_v12 = vld [vmem:[#allocation10 + $0x34] ss:$8 sps:$4 sm:$0xff]  }
  0x8e   :  { %507 = vmatprep.subr.bf16.mxu0 %v1515_v41  ;;  %1130 = vmatprep.subr.bf16.mxu1 %v1521_v35  ;;  %v1535_v41 = vld [vmem:[#allocation10 + $0x50] ss:$8 sps:$4 sm:$0xff]  }
  0x91   :  { %508 = vmatpush1.bf16.msra.mxu0 %v1517_v27  ;;  %1131 = vmatpush1.bf16.msra.mxu1 %v1523_v36  ;;  %v1538_v27 = vld [vmem:[#allocation10 + $0x60] ss:$8 sps:$4 sm:$0xff]  }
  0x92   :  { %1132 = vmatprep.subr.bf16.mxu1 %v1524_v11  ;;  %v1542_v11 = vld [vmem:[#allocation10 + $0x84] ss:$8 sps:$4 sm:$0xff]  }
  0x95   :  { %1133 = vmatpush1.bf16.msra.mxu1 %v1526_v37 }
  0x96   :  { %1134 = vmatprep.subr.bf16.mxu1 %v1527_v12 }
  0xee   :  { %v349_v13 = vpop.permute.xlu1 %348 }
  0xef   :  { %v357_v46 = vsel %vm345_vm7, %v349_v13, 0.0  ;;  %v1539_v13 = vld [vmem:[#allocation10 + $0x74] ss:$8 sps:$4 sm:$0xff]  }
  0xf0   :  { %v332_v29 = vpop.permute.xlu0 %331 }
  0xf1   :  { %v341_v44 = vsel %vm330_vm6, %v332_v29, 0.0  ;;  %v1541_v29 = vld [vmem:[#allocation10 + $0x70] ss:$8 sps:$4 sm:$0xff]  }
  0xf2   :  { %v360_v45 = vadd.f32 %v341_v44, %v294_v22  ;;  %v347_v47 = vpop.permute.xlu1 %346  ;;  %v1529_v22 = vld [vmem:[#allocation10 + $0x30] ss:$8 sps:$4 sm:$0xff]  }
  0xf3   :  { %v356_v48 = vsel %vm345_vm7, %v347_v47, 0.0  ;;  %1135 = vmatpush1.bf16.msra.mxu1 %v1529_v22  ;;  %v401_v44 = vld [vmem:[%s2637_s4] sm:$0x3]  ;;  %s1770_s4 = smov 112  }
  0xf4   :  { %v364_v49 = vadd.f32 %v360_v45, %v356_v48  ;;  %v334_v23 = vpop.permute.xlu0 %333  ;;  %v602_v45 = vld [vmem:[#allocation8] sm:$0xff]  ;;  %v406_v47 = vrot.slane %v401_v44, %v1957_v6  ;;  %v603_v48 = vld [vmem:[#allocation8 + $0x8] sm:$0xff] }
  0xf5   :  { %v342_v31 = vsel %vm330_vm6, %v334_v23, 0.0  ;;  %v2163_v23 = vrot.slane %v602_v45, %v1960_v8 }
  0xf6   :  { %v361_v50 = vadd.f32 %v342_v31, %v295_v38  ;;  %v338_v51 = vpop.permute.xlu1 %337  ;;  %v375_v30 = vadd.f32 %v1389_v0, %v364_v49  ;;  %v1530_v38 = vld [vmem:[#allocation10 + $0x44] ss:$8 sps:$4 sm:$0xff]   ;;  %v2160_v49 = vrot.slane %v401_v44, %v1982_v16  ;;  %v1545_v44 = vld [vmem:[#allocation11] ss:$8 sps:$4 sm:$0xff]  }
  0xf7   :  { %v344_v52 = vsel %vm330_vm6, %v338_v51, 0.0  ;;  %1136 = vmatprep.subr.bf16.mxu1 %v1530_v38  ;;  %v2172_v51 = vrot.slane %v602_v45, %v1963_v9 }
  0xf8   :  { %v365_v53 = vadd.f32 %v361_v50, %v357_v46  ;;  %v363_v54 = vadd.f32 %v344_v52, %v297_v42  ;;  %v379_v60 = vmax.f32 %v375_v30, 0.0  ;;  %v1532_v42 = vld [vmem:[#allocation10 + $0x40] ss:$8 sps:$4 sm:$0xff]   ;;  %v2169_v50 = vrot.slane %v602_v45, %v1957_v6 }
  0xf9   :  { %v336_v56 = vpop.permute.xlu0 %335  ;;  %1137 = vmatpush1.bf16.msra.mxu1 %v1532_v42  ;;  %v2175_v46 = vrot.slane %v602_v45, %v1950_v3  ;;  %v2178_v52 = vrot.slane %v603_v48, %v1960_v8  ;;  %v2194_v8 = vrot.slane %v602_v45, %v2107_v55 }
  0xfa   :  { %v376_v57 = vadd.f32 %v1389_v0, %v365_v53  ;;  %v343_v26 = vsel %vm330_vm6, %v336_v56, 0.0  ;;  %v353_v58 = vpop.permute.xlu1 %352  ;;  %1138 = vmatprep.subr.bf16.mxu1 %v1533_v43  ;;  %v2184_v56 = vrot.slane %v603_v48, %v1963_v9 }
  0xfb   :  { %v362_v24 = vadd.f32 %v343_v26, %v296_v39  ;;  %v359_v59 = vsel %vm345_vm7, %v353_v58, 0.0  ;;  %v1536_v39 = vld [vmem:[#allocation10 + $0x64] ss:$8 sps:$4 sm:$0xff]  }
  0xfc   :  { %v367_v61 = vadd.f32 %v363_v54, %v359_v59  ;;  %v380_v62 = vmax.f32 %v376_v57, 0.0  ;;  %v2181_v54 = vrot.slane %v603_v48, %v1957_v6  ;;  %v2187_v57 = vrot.slane %v603_v48, %v1953_v4  ;;  %v1554_v6 = vld [vmem:[#allocation10 + $0xa4] ss:$8 sps:$4 sm:$0xff]  }
  0xfd   :  { %v351_v63 = vpop.permute.xlu0 %350  ;;  %1139 = vmatpush1.bf16.msra.mxu1 %v1535_v41  ;;  %v2197_v59 = vrot.slane %v603_v48, %v2107_v55  ;;  %v2214_v55 = vrot.slane %v603_v48, %v2111_v25 }
  0xfe   :  { %v378_v2 = vadd.f32 %v1389_v0, %v367_v61  ;;  %v358_v7 = vsel %vm345_vm7, %v351_v63, 0.0  ;;  %v399_v40 = vpack.c.bf16 %v380_v62, %v379_v60  ;;  %1140 = vmatprep.subr.bf16.mxu1 %v1536_v39  ;;  %v2202_v62 = vrot.slane %v602_v45, %v1982_v16 }
  0xff   :  { %v366_v20 = vadd.f32 %v362_v24, %v358_v7  ;;  %v2191_v24 = vrot.slane %v603_v48, %v1950_v3  ;;  %2673 = vst [vmem:[#allocation23_spill] sm:$0xff] %v2214_v55 }
 0x100   :  { %526 = vmatmul.mubr.bf16.vlgmr.msra.gmra.mrb[0].mxu0 %v399_v40  ;;  %v382_v32 = vmax.f32 %v378_v2, 0.0  ;;  %v2211_v2 = vrot.slane %v603_v48, %v1982_v16 }
 0x101   :  { %v377_v21 = vadd.f32 %v1389_v0, %v366_v20  ;;  %535 = vmatprep.mubr.bf16.mxu0 %v2645_v5  ;;  %1141 = vmatpush1.bf16.msra.mxu1 %v1538_v27  ;;  %v2166_v0 = vrot.slane %v602_v45, %v1953_v4  ;;  %v2205_v4 = vrot.slane %v602_v45, %v2111_v25 }
 0x102   :  { %1142 = vmatprep.subr.bf16.mxu1 %v1539_v13 }
 0x103   :  { %v381_v28 = vmax.f32 %v377_v21, 0.0  ;;  %2672 = vst [vmem:[#allocation22_spill] sm:$0xff] %v2205_v4 }
 0x105   :  { %v400_v10 = vpack.c.bf16 %v382_v32, %v381_v28  ;;  %1143 = vmatpush1.bf16.msra.mxu1 %v1541_v29  ;;  %v1544_v29 = vld [vmem:[#allocation10 + $0x80] ss:$8 sps:$4 sm:$0xff]  }
 0x106   :  { %1144 = vmatprep.subr.bf16.mxu1 %v1542_v11 }
 0x108   :  { %536 = vmatmul.mubr.bf16.gmra.mrb[4].mxu0 %v400_v10 }
 0x109   :  { %1323 = vmatprep.mubr.bf16.mxu0 %v2645_v5  ;;  %1145 = vmatpush1.bf16.msra.mxu1 %v1544_v29 }
 0x1d3   :  { %v527_v31 = vpop.f32.mrb[0].mxu0 }
 0x1d4   :  { %v528_v30 = vadd.f32 %v527_v31, %v406_v47  ;;  %v529_v53 = vpop.f32.mrb[1].mxu0 }
 0x1d5   :  { %v530_v26 = vadd.f32 %v529_v53, %v2160_v49  ;;  %v531_v58 = vpop.f32.mrb[2].mxu0 }
 0x1d6   :  { %v2199_v60 = vmax.f32 %v528_v30, 0.0  ;;  %v532_v61 = vadd.f32 %v531_v58, %v406_v47  ;;  %v533_v9 = vpop.f32.mrb[3].mxu0 }
 0x1d7   :  { %v2207_v63 = vmax.f32 %v530_v26, 0.0  ;;  %v534_v3 = vadd.f32 %v533_v9, %v2160_v49  ;;  %v1547_v26 = vld [vmem:[#allocation11 + $0x4] ss:$8 sps:$4 sm:$0xff]  }
 0x1d8   :  { %v2216_v7 = vmax.f32 %v532_v61, 0.0  ;;  %v2648_v40 = vrot.slane %v2199_v60, 7  ;;  %v2647_v20 = vrot.slane %v2199_v60, 1  ;;  %v2222_v32 = vmul.f32 %v2163_v23, %v2199_v60  ;;  %1291 = vmatprep.subr.bf16.mxu0 %v1547_v26  ;;  %v2301_v26 = vld [vmem:[#allocation8 + $0x10] ss:$0 sm:$0xff] }
 0x1d9   :  { %v2224_v21 = vmax.f32 %v534_v3, 0.0  ;;  %v2646_v28 = vrot.slane %v2207_v63, 7  ;;  %v2229_v10 = vmul.f32 %v2166_v0, %v2199_v60  ;;  %v2260_v13 = vmul.f32 %v2178_v52, %v2207_v63  ;;  %1292 = vmatpush1.bf16.msra.mxu0 %v1545_v44 }
 0x1da   :  { %2674 = vst [vmem:[#allocation24_spill] sm:$0xff] %v2216_v7  ;;  %v556_v33 = vrot.slane %v2216_v7, 7  ;;  %v580_v34 = vrot.slane %v2216_v7, 1  ;;  %v632_v35 = vmul.f32 %v2163_v23, %v2216_v7  ;;  %v760_v36 = vmul.f32 %v2166_v0, %v2216_v7 }
 0x1db   :  { %v537_v37 = vpop.f32.mrb[4].mxu0  ;;  %v557_v12 = vrot.slane %v2224_v21, 7  ;;  %v633_v38 = vmul.f32 %v2178_v52, %v2224_v21  ;;  %v2244_v42 = vmul.f32 %v2187_v57, %v2224_v21  ;;  %v2678_v17 = vrot.slane %v2199_v60, 7 }
 0x1dc   :  { %v538_v43 = vadd.f32 %v537_v37, %v406_v47  ;;  %v539_v41 = vpop.f32.mrb[5].mxu0  ;;  %v2250_v39 = vsel %vm194_vm0, %v2648_v40, %v556_v33  ;;  %v2256_v27 = vsel %vm215_vm1, %v2647_v20, %v580_v34  ;;  %v1548_v37 = vld [vmem:[#allocation10 + $0x94] ss:$8 sps:$4 sm:$0xff]  }
 0x1dd   :  { %2675 = vst [vmem:[#allocation25_spill] sm:$0xff] %v2250_v39  ;;  %v540_v45 = vadd.f32 %v539_v41, %v2160_v49  ;;  %v541_v48 = vpop.f32.mrb[6].mxu0  ;;  %v616_v31 = vmul.f32 %v2169_v50, %v2250_v39  ;;  %v744_v30 = vmul.f32 %v2175_v46, %v2250_v39  ;;  %v2271_v53 = vsel %vm194_vm0, %v2646_v28, %v557_v12  ;;  %v1553_v40 = vld [vmem:[#allocation11 + $0x14] ss:$8 sps:$4 sm:$0xff]  }
 0x1de   :  { %v2273_v58 = vmax.f32 %v538_v43, 0.0  ;;  %v542_v61 = vadd.f32 %v541_v48, %v406_v47  ;;  %v543_v9 = vpop.f32.mrb[7].mxu0  ;;  %v617_v3 = vmul.f32 %v2181_v54, %v2271_v53  ;;  %v2279_v11 = vmul.f32 %v2172_v51, %v2256_v27  ;;  %1146 = vmatprep.subr.bf16.mxu1 %v1548_v37  ;;  %1293 = vmatprep.subr.bf16.mxu0 %v1553_v40 }
 0x1df   :  { %v2281_v41 = vmax.f32 %v540_v45, 0.0  ;;  %v544_v5 = vadd.f32 %v543_v9, %v2160_v49  ;;  %v640_v28 = vadd.f32 %v632_v35, %v616_v31  ;;  %v768_v25 = vadd.f32 %v760_v36, %v744_v30  ;;  %v1550_v9 = vld [vmem:[#allocation10 + $0x90] ss:$8 sps:$4 sm:$0xff]  }
 0x1e0   :  { %v2284_v43 = vmax.f32 %v542_v61, 0.0  ;;  %v582_v47 = vrot.slane %v2273_v58, 1  ;;  %v558_v48 = vrot.slane %v2273_v58, 7  ;;  %v634_v20 = vmul.f32 %v2163_v23, %v2273_v58  ;;  %1147 = vmatpush1.bf16.msra.mxu1 %v1550_v9  ;;  %v2349_v9 = vld [vmem:[#allocation8 + $0x18] ss:$0 sm:$0xff] }
 0x1e1   :  { %v2290_v29 = vmax.f32 %v544_v5, 0.0  ;;  %v2649_v45 = vrot.slane %v2281_v41, 7  ;;  %v583_v49 = vrot.slane %v2281_v41, 1  ;;  %v635_v35 = vmul.f32 %v2178_v52, %v2281_v41  ;;  %1148 = vmatprep.subr.bf16.mxu1 %v1554_v6 }
 0x1e2   :  { %v588_v36 = vsel %vm215_vm1, %v580_v34, %v582_v47  ;;  %v564_v31 = vsel %vm194_vm0, %v556_v33, %v558_v48  ;;  %v584_v30 = vrot.slane %v2284_v43, 1  ;;  %v641_v44 = vadd.f32 %v633_v38, %v617_v3 }
 0x1e3   :  { %v2305_v5 = vsel %vm1984_vm3, %v588_v36, 0.0  ;;  %v2309_v61 = vsel %vm2082_vm5, %v564_v31, 0.0  ;;  %v565_v34 = vsel %vm194_vm0, %v557_v12, %v2649_v45  ;;  %v585_v33 = vrot.slane %v2290_v29, 1  ;;  %v1551_v31 = vld [vmem:[#allocation11 + $0x10] ss:$8 sps:$4 sm:$0xff]  }
 0x1e4   :  { %2676 = vst [vmem:[#allocation26_spill] sm:$0xff] %v2305_v5  ;;  %v656_v37 = vmul.f32 %v2172_v51, %v2305_v5  ;;  %v2320_v38 = vsel %vm215_vm1, %v582_v47, %v584_v30  ;;  %v618_v3 = vmul.f32 %v2169_v50, %v2309_v61  ;;  %v784_v36 = vmul.f32 %v2301_v26, %v2305_v5 }
 0x1e5   :  { %v658_v12 = vmul.f32 %v2172_v51, %v2320_v38  ;;  %v2330_v45 = vsel %vm2082_vm5, %v565_v34, 0.0  ;;  %v2334_v22 = vsel %vm215_vm1, %v583_v49, %v585_v33  ;;  %v2677_v47 = vrot.slane %v2224_v21, 1  ;;  %v1559_v34 = vld [vmem:[#allocation11 + $0x24] ss:$8 sps:$4 sm:$0xff]   ;;  %1294 = vmatpush1.bf16.msra.mxu0 %v1551_v31  ;;  %1149 = vmatpush1.bf16.msra.mxu1 %v1556_v19 }
 0x1e6   :  { %v664_v5 = vadd.f32 %v656_v37, %v640_v28  ;;  %v642_v7 = vadd.f32 %v634_v20, %v618_v3  ;;  %v792_v39 = vadd.f32 %v784_v36, %v768_v25  ;;  %v619_v15 = vmul.f32 %v2181_v54, %v2330_v45  ;;  %v1557_v28 = vld [vmem:[#allocation11 + $0x20] ss:$8 sps:$4 sm:$0xff]   ;;  %1295 = vmatprep.subr.bf16.mxu0 %v1559_v34 }
 0x1e7   :  { %v589_v16 = vsel %vm215_vm1, %v2677_v47, %v583_v49  ;;  %v659_v55 = vmul.f32 %v2184_v56, %v2334_v22  ;;  %v560_v49 = vrot.slane %v2284_v43, 7  ;;  %v745_v20 = vmul.f32 %v2191_v24, %v2271_v53 }
 0x1e8   :  { %v2346_v4 = vsel %vm1984_vm3, %v589_v16, 0.0  ;;  %802 = vrot.lane.b32.xlu1 %v664_v5, %s1763_s18  ;;  %v666_v40 = vadd.f32 %v658_v12, %v642_v7  ;;  %v643_v25 = vadd.f32 %v635_v35, %v619_v15  ;;  %v782_v6 = vmul.f32 %v2301_v26, %v2256_v27 }
 0x1e9   :  { %v657_v37 = vmul.f32 %v2184_v56, %v2346_v4  ;;  %v785_v16 = vmul.f32 %v2349_v9, %v2346_v4  ;;  %v568_v3 = vsel %vm194_vm0, %v560_v49, %v2678_v17  ;;  %v769_v36 = vadd.f32 %v2244_v42, %v745_v20  ;;  %1296 = vmatpush1.bf16.msra.mxu0 %v1557_v28 }
 0x1ea   :  { %v2367_v7 = vsel %vm194_vm0, %v558_v48, %v560_v49  ;;  %804 = vrot.lane.b32.xlu0 %v666_v40, %s1763_s18  ;;  %v667_v35 = vadd.f32 %v659_v55, %v643_v25  ;;  %v2372_v31 = vsel %vm1974_vm2, %v568_v3, 0.0  ;;  %v2679_v12 = vrot.slane %v2199_v60, 1  ;;  %v1560_v49 = vld [vmem:[#allocation10 + $0xb4] ss:$8 sps:$4 sm:$0xff]   ;;  %v1562_v25 = vld [vmem:[#allocation10 + $0xb0] ss:$8 sps:$4 sm:$0xff]  }
 0x1eb   :  { %v665_v5 = vadd.f32 %v657_v37, %v641_v44  ;;  %v614_v47 = vmul.f32 %v2169_v50, %v2372_v31  ;;  %v793_v48 = vadd.f32 %v785_v16, %v769_v36  ;;  %v742_v19 = vmul.f32 %v2175_v46, %v2372_v31  ;;  %v1565_v37 = vld [vmem:[#allocation11 + $0x34] ss:$8 sps:$4 sm:$0xff]   ;;  %1150 = vmatprep.subr.bf16.mxu1 %v1560_v49 }
 0x1ec   :  { %v592_v42 = vsel %vm215_vm1, %v584_v30, %v2679_v12  ;;  %841 = vrot.lane.b32.xlu1 %v792_v39, %s1770_s4  ;;  %v620_v44 = vmul.f32 %v2169_v50, %v2367_v7  ;;  %v636_v30 = vmul.f32 %v2163_v23, %v2284_v43  ;;  %v561_v34 = vrot.slane %v2290_v29, 7  ;;  %1297 = vmatprep.subr.bf16.mxu0 %v1565_v37 }
 0x1ed   :  { %v2384_v55 = vsel %vm2065_vm4, %v592_v42, 0.0  ;;  %v638_v20 = vadd.f32 %v2222_v32, %v614_v47  ;;  %v766_v40 = vadd.f32 %v2229_v10, %v742_v19  ;;  %v2680_v28 = vrot.slane %v2224_v21, 1  ;;  %v1563_v47 = vld [vmem:[#allocation11 + $0x30] ss:$8 sps:$4 sm:$0xff]   ;;  %1151 = vmatpush1.bf16.msra.mxu1 %v1562_v25 }
 0x1ee   :  { %v660_v15 = vmul.f32 %v2172_v51, %v2384_v55  ;;  %v2681_v39 = vrot.slane %v2207_v63, 1  ;;  %812 = vrot.lane.b32.xlu0 %v667_v35, %s1763_s18  ;;  %v644_v32 = vadd.f32 %v636_v30, %v620_v44  ;;  %v2683_v10 = vrot.slane %v2207_v63, 7  ;;  %v1566_v30 = vld [vmem:[#allocation10 + $0xc4] ss:$8 sps:$4 sm:$0xff]   ;;  %1298 = vmatpush1.bf16.msra.mxu0 %v1563_v47 }
 0x1ef   :  { %v2684_v3 = vrot.slane %v2281_v41, 7  ;;  %v790_v12 = vadd.f32 %v782_v6, %v766_v40  ;;  %v637_v14 = vmul.f32 %v2178_v52, %v2290_v29  ;;  %v759_v44 = vmul.f32 %v2187_v57, %v2207_v63  ;;  %1152 = vmatprep.subr.bf16.mxu1 %v1566_v30  ;;  %v1578_v30 = vld [vmem:[#allocation10 + $0xe4] ss:$8 sps:$4 sm:$0xff]  }
 0x1f0   :  { %v2402_v50 = vsel %vm215_vm1, %v2681_v39, %v2680_v28  ;;  %v2682_v23 = vmov %v2681_v39  ;;  %v569_v16 = vsel %vm194_vm0, %v561_v34, %v2683_v10  ;;  %810 = vrot.lane.b32.xlu1 %v665_v5, %s1763_s18  ;;  %v668_v19 = vadd.f32 %v660_v15, %v644_v32  ;;  %v1568_v28 = vld [vmem:[#allocation10 + $0xc0] ss:$8 sps:$4 sm:$0xff]   ;;  %v1572_v10 = vld [vmem:[#allocation10 + $0xd4] ss:$8 sps:$4 sm:$0xff]  }
 0x1f1   :  { %v593_v51 = vsel %vm215_vm1, %v585_v33, %v2682_v23  ;;  %v655_v17 = vmul.f32 %v2184_v56, %v2402_v50  ;;  %v2419_v36 = vsel %vm194_vm0, %v2684_v3, %v561_v34  ;;  %v662_v33 = vadd.f32 %v2279_v11, %v638_v20  ;;  %v1569_v3 = vld [vmem:[#allocation11 + $0x40] ss:$8 sps:$4 sm:$0xff]   ;;  %1153 = vmatpush1.bf16.msra.mxu1 %v1568_v28  ;;  %v2689_v28 = vld [vmem:[#allocation26_spill] sm:$0xff] }
 0x1f2   :  { %v2424_v35 = vsel %vm1974_vm2, %v569_v16, 0.0  ;;  %v2428_v42 = vsel %vm2065_vm4, %v593_v51, 0.0  ;;  %v621_v11 = vmul.f32 %v2181_v54, %v2419_v36  ;;  %v783_v5 = vmul.f32 %v2349_v9, %v2402_v50  ;;  %1154 = vmatprep.subr.bf16.mxu1 %v1572_v10  ;;  %v1581_v10 = vld [vmem:[#allocation11 + $0x60] ss:$8 sps:$4 sm:$0xff]  }
 0x1f3   :  { %v615_v1 = vmul.f32 %v2181_v54, %v2424_v35  ;;  %v661_v18 = vmul.f32 %v2184_v56, %v2428_v42  ;;  %v743_v6 = vmul.f32 %v2191_v24, %v2424_v35  ;;  %800 = vrot.lane.b32.xlu0 %v662_v33, %s1763_s18  ;;  %v748_v52 = vmul.f32 %v2175_v46, %v2367_v7 }
 0x1f4   :  { %v645_v15 = vadd.f32 %v637_v14, %v621_v11  ;;  %v764_v56 = vmul.f32 %v2166_v0, %v2284_v43  ;;  %v788_v49 = vmul.f32 %v2301_v26, %v2384_v55  ;;  %v746_v20 = vmul.f32 %v2175_v46, %v2309_v61  ;;  %849 = vrot.lane.b32.xlu1 %v793_v48, %s1770_s4 }
 0x1f5   :  { %v639_v54 = vadd.f32 %v2260_v13, %v615_v1  ;;  %v767_v34 = vadd.f32 %v759_v44, %v743_v6  ;;  %v762_v40 = vmul.f32 %v2166_v0, %v2273_v58  ;;  %v786_v51 = vmul.f32 %v2301_v26, %v2320_v38  ;;  %v1571_v0 = vld [vmem:[#allocation11 + $0x44] ss:$8 sps:$4 sm:$0xff]  }
 0x1f6   :  { %v669_v39 = vadd.f32 %v661_v18, %v645_v15  ;;  %v772_v23 = vadd.f32 %v764_v56, %v748_v52  ;;  %v749_v32 = vmul.f32 %v2191_v24, %v2419_v36  ;;  %v765_v46 = vmul.f32 %v2187_v57, %v2290_v29  ;;  %1299 = vmatprep.subr.bf16.mxu0 %v1571_v0 }
 0x1f7   :  { %v663_v13 = vadd.f32 %v655_v17, %v639_v54  ;;  %v791_v25 = vadd.f32 %v783_v5, %v767_v34  ;;  %v770_v37 = vadd.f32 %v762_v40, %v746_v20  ;;  %839 = vrot.lane.b32.xlu0 %v790_v12, %s1770_s4  ;;  %v789_v16 = vmul.f32 %v2349_v9, %v2428_v42  ;;  %v1574_v12 = vld [vmem:[#allocation10 + $0xd0] ss:$8 sps:$4 sm:$0xff]  }
 0x1f8   :  { %v796_v48 = vadd.f32 %v788_v49, %v772_v23  ;;  %v747_v26 = vmul.f32 %v2191_v24, %v2330_v45  ;;  %v763_v17 = vmul.f32 %v2187_v57, %v2281_v41  ;;  %v773_v47 = vadd.f32 %v765_v46, %v749_v32  ;;  %806 = vrot.lane.b32.xlu1 %v668_v19, %s1763_s18  ;;  %v1577_v19 = vld [vmem:[#allocation11 + $0x54] ss:$8 sps:$4 sm:$0xff]   ;;  %v1575_v34 = vld [vmem:[#allocation11 + $0x50] ss:$8 sps:$4 sm:$0xff]   ;;  %v1580_v49 = vld [vmem:[#allocation10 + $0xe0] ss:$8 sps:$4 sm:$0xff]  }
 0x1f9   :  { %v794_v33 = vadd.f32 %v786_v51, %v770_v37  ;;  %v787_v1 = vmul.f32 %v2349_v9, %v2334_v22  ;;  %v682_v11 = vmul.f32 %v2202_v62, %v2309_v61  ;;  %v683_v24 = vmul.f32 %v2211_v2, %v2330_v45  ;;  %v2685_v9 = vld [vmem:[#allocation22_spill] sm:$0xff]  ;;  %v2686_v61 = vld [vmem:[#allocation23_spill] sm:$0xff]  ;;  %1300 = vmatpush1.bf16.msra.mxu0 %v1569_v3 }
 0x1fa   :  { %v771_v14 = vadd.f32 %v763_v17, %v747_v26  ;;  %v698_v57 = vmul.f32 %v2194_v8, %v2273_v58  ;;  %v699_v18 = vmul.f32 %v2197_v59, %v2281_v41  ;;  %v797_v6 = vadd.f32 %v789_v16, %v773_v47  ;;  %v2687_v58 = vld [vmem:[#allocation25_spill] sm:$0xff]  ;;  %1155 = vmatpush1.bf16.msra.mxu1 %v1574_v12 }
 0x1fb   :  { %v722_v44 = vmul.f32 %v2685_v9, %v2320_v38  ;;  %v723_v5 = vmul.f32 %v2686_v61, %v2334_v22  ;;  %808 = vrot.lane.b32.xlu0 %v663_v13, %s1763_s18  ;;  %v680_v41 = vmul.f32 %v2202_v62, %v2687_v58  ;;  %v681_v52 = vmul.f32 %v2211_v2, %v2271_v53  ;;  %v2688_v38 = vld [vmem:[#allocation24_spill] sm:$0xff]  ;;  %v1586_v26 = vld [vmem:[#allocation10 + $0xf0] ss:$8 sps:$4 sm:$0xff]   ;;  %v1589_v47 = vld [vmem:[#allocation11 + $0x74] ss:$8 sps:$4 sm:$0xff]  }
 0x1fc   :  { %v795_v45 = vadd.f32 %v787_v1, %v771_v14  ;;  %v706_v54 = vadd.f32 %v698_v57, %v682_v11  ;;  %v707_v15 = vadd.f32 %v699_v18, %v683_v24  ;;  %v696_v56 = vmul.f32 %v2194_v8, %v2688_v38  ;;  %814 = vrot.lane.b32.xlu1 %v669_v39, %s1763_s18  ;;  %v1593_v11 = vld [vmem:[#allocation2 + $0x18] sm:$0xff] }
 0x1fd   :  { %v697_v22 = vmul.f32 %v2197_v59, %v2224_v21  ;;  %v720_v13 = vmul.f32 %v2685_v9, %v2689_v28  ;;  %v721_v53 = vmul.f32 %v2686_v61, %v2346_v4  ;;  %1301 = vmatprep.subr.bf16.mxu0 %v1577_v19  ;;  %1156 = vmatprep.subr.bf16.mxu1 %v1578_v30  ;;  %v1583_v21 = vld [vmem:[#allocation11 + $0x64] ss:$8 sps:$4 sm:$0xff]  }
 0x1fe   :  { %v2496_v20 = vadd.f32 %v722_v44, %v706_v54  ;;  %v2498_v40 = vadd.f32 %v723_v5, %v707_v15  ;;  %v704_v23 = vadd.f32 %v696_v56, %v680_v41  ;;  %v678_v39 = vmul.f32 %v2202_v62, %v2372_v31  ;;  %1302 = vmatpush1.bf16.msra.mxu0 %v1575_v34  ;;  %v892_v41 = vld [vmem:[%s2639_s6] sm:$0x3] }
 0x1ff   :  { %v705_v51 = vadd.f32 %v697_v22, %v681_v52  ;;  %847 = vrot.lane.b32.xlu0 %v791_v25, %s1770_s4  ;;  %v679_v37 = vmul.f32 %v2211_v2, %v2424_v35  ;;  %v694_v32 = vmul.f32 %v2194_v8, %v2199_v60  ;;  %v695_v4 = vmul.f32 %v2197_v59, %v2207_v63  ;;  %v1584_v25 = vld [vmem:[#allocation10 + $0xf4] ss:$8 sps:$4 sm:$0xff]  }
 0x200   :  { %v2511_v46 = vadd.f32 %v720_v13, %v704_v23  ;;  %1157 = vmatpush1.bf16.msra.mxu1 %v1580_v49  ;;  %845 = vrot.lane.b32.xlu1 %v796_v48, %s1770_s4  ;;  %v718_v35 = vmul.f32 %v2685_v9, %v2256_v27  ;;  %v719_v60 = vmul.f32 %v2686_v61, %v2402_v50  ;;  %v2692_v49 = vld [vmem:[#allocation19_spill] sm:$0xff] }
 0x201   :  { %v2513_v0 = vadd.f32 %v721_v53, %v705_v51  ;;  %v702_v31 = vadd.f32 %v694_v32, %v678_v39  ;;  %v684_v16 = vmul.f32 %v2202_v62, %v2367_v7  ;;  %v703_v17 = vadd.f32 %v695_v4, %v679_v37  ;;  %1303 = vmatprep.subr.bf16.mxu0 %v1583_v21  ;;  %v2693_v53 = vld [vmem:[#allocation20_spill] sm:$0xff] }
 0x202   :  { %v685_v63 = vmul.f32 %v2211_v2, %v2419_v36  ;;  %v700_v3 = vmul.f32 %v2194_v8, %v2284_v43  ;;  %v701_v48 = vmul.f32 %v2197_v59, %v2290_v29  ;;  %v724_v50 = vmul.f32 %v2685_v9, %v2384_v55  ;;  %1304 = vmatpush1.bf16.msra.mxu0 %v1581_v10  ;;  %v1587_v8 = vld [vmem:[#allocation11 + $0x70] ss:$8 sps:$4 sm:$0xff]  }
 0x203   :  { %843 = vrot.lane.b32.xlu0 %v794_v33, %s1770_s4  ;;  %v726_v27 = vadd.f32 %v718_v35, %v702_v31  ;;  %v725_v62 = vmul.f32 %v2686_v61, %v2428_v42  ;;  %v727_v7 = vadd.f32 %v719_v60, %v703_v17  ;;  %1158 = vmatprep.subr.bf16.mxu1 %v1584_v25  ;;  %v1590_v29 = vld [vmem:[#allocation2] sm:$0xff]  ;;  %v1591_v55 = vld [vmem:[#allocation2 + $0x8] sm:$0xff]  ;;  %v2690_v42 = vmov 0   ;;  %v1592_v33 = vld [vmem:[#allocation2 + $0x10] sm:$0xff] }
 0x204   :  { %v708_v1 = vadd.f32 %v700_v3, %v684_v16  ;;  %v709_v2 = vadd.f32 %v701_v48, %v685_v63  ;;  %853 = vrot.lane.b32.xlu1 %v797_v6, %s1770_s4  ;;  %1159 = vmatpush1.bf16.msra.mxu1 %v1586_v26  ;;  %v1197_v36 = vpack.c.bf16 %v1591_v55, %v1590_v29  ;;  %v2691_v9 = vld [vmem:[#allocation21_spill] sm:$0xff] }
 0x205   :  { %1305 = vmatprep.subr.bf16.mxu0 %v1589_v47  ;;  %v1198_v12 = vpack.c.bf16 %v1593_v11, %v1592_v33  ;;  %vm816_vm8 = vcmp.lt.s32.totalorder %v2691_v9, 16  ;;  %v2546_v5 = vadd.s32 128, %v2691_v9  ;;  %vm855_vm9 = vcmp.lt.s32.totalorder %v2691_v9, 112 }
 0x206   :  { %v2536_v59 = vadd.f32 %v724_v50, %v708_v1  ;;  %v2538_v43 = vadd.f32 %v725_v62, %v709_v2  ;;  %1306 = vmatpush1.bf16.msra.mxu0 %v1587_v8  ;;  %vm798_vm10 = vcmp.ge.s32.totalorder %v2691_v9, 16  ;;  %v897_v28 = vrot.slane %v892_v41, %v2692_v49 }
 0x207   :  { %851 = vrot.lane.b32.xlu0 %v795_v45, %s1770_s4  ;;  %vm838_vm11 = vcmp.lt.s32.totalorder %v2546_v5, 240  ;;  %v901_v23 = vrot.slane %v892_v41, %v2693_v53 }
 0x209   :  { %1324 = vmatmul.mubr.bf16.vlgmr.msra.gmra.mrb[8].mxu0 %v1197_v36 }
 0x20a   :  { %1333 = vmatprep.mubr.bf16.mxu0 %v2690_v42 }
 0x211   :  { %1334 = vmatmul.mubr.bf16.gmra.mrb[12].mxu0 %v1198_v12 }
 0x25a   :  { %v803_v14 = vpop.permute.xlu1 %802 }
 0x25c   :  { %v805_v24 = vpop.permute.xlu0 %804 }
 0x25e   :  { %v842_v57 = vpop.permute.xlu1 %841 }
 0x260   :  { %v813_v18 = vpop.permute.xlu0 %812 }
 0x261   :  { %v823_v25 = vsel %vm816_vm8, %v813_v18, %v805_v24 }
 0x262   :  { %v811_v6 = vpop.permute.xlu1 %810 }
 0x263   :  { %v822_v44 = vsel %vm816_vm8, %v811_v6, %v803_v14  ;;  %v818_v15 = vsel %vm816_vm8, %v803_v14, %v811_v6 }
 0x264   :  { %v831_v30 = vsel %vm798_vm10, %v822_v44, 0.0  ;;  %v879_v22 = vadd.f32 %v818_v15, %v2513_v0  ;;  %v819_v0 = vsel %vm816_vm8, %v805_v24, %v813_v18 }
 0x265   :  { %v801_v61 = vpop.permute.xlu0 %800  ;;  %v878_v58 = vadd.f32 %v831_v30, %v2511_v46  ;;  %v881_v1 = vadd.f32 %v819_v0, %v2498_v40 }
 0x266   :  { %v850_v19 = vpop.permute.xlu1 %849 }
 0x267   :  { %v861_v45 = vsel %vm855_vm9, %v850_v19, %v842_v57  ;;  %v857_v38 = vsel %vm855_vm9, %v842_v57, %v850_v19 }
 0x268   :  { %v871_v56 = vsel %vm838_vm11, %v861_v45, 0.0  ;;  %v886_v51 = vadd.f32 %v878_v58, %v857_v38 }
 0x269   :  { %v840_v54 = vpop.permute.xlu0 %839  ;;  %v887_v21 = vadd.f32 %v879_v22, %v871_v56 }
 0x26a   :  { %v807_v52 = vpop.permute.xlu1 %806  ;;  %v906_v16 = vadd.f32 %v897_v28, %v886_v51 }
 0x26b   :  { %v907_v3 = vadd.f32 %v901_v23, %v887_v21 }
 0x26c   :  { %v914_v8 = vmax.f32 %v906_v16, 0.0 }
 0x26d   :  { %v809_v34 = vpop.permute.xlu0 %808  ;;  %v915_v42 = vmax.f32 %v907_v3, 0.0 }
 0x26e   :  { %v821_v13 = vsel %vm816_vm8, %v809_v34, %v801_v61  ;;  %v817_v39 = vsel %vm816_vm8, %v801_v61, %v809_v34  ;;  %v815_v32 = vpop.permute.xlu1 %814 }
 0x26f   :  { %v829_v37 = vsel %vm798_vm10, %v821_v13, 0.0  ;;  %v824_v4 = vsel %vm816_vm8, %v815_v32, %v807_v52  ;;  %v877_v31 = vadd.f32 %v817_v39, %v727_v7  ;;  %v833_v7 = vsel %vm798_vm10, %v823_v25, 0.0 }
 0x270   :  { %v876_v46 = vadd.f32 %v829_v37, %v726_v27  ;;  %v835_v48 = vsel %vm798_vm10, %v824_v4, 0.0  ;;  %v820_v27 = vsel %vm816_vm8, %v807_v52, %v815_v32  ;;  %v880_v24 = vadd.f32 %v833_v7, %v2496_v20 }
 0x271   :  { %v848_v10 = vpop.permute.xlu0 %847  ;;  %v882_v29 = vadd.f32 %v835_v48, %v2536_v59  ;;  %v883_v33 = vadd.f32 %v820_v27, %v2538_v43 }
 0x272   :  { %v856_v35 = vsel %vm855_vm9, %v840_v54, %v848_v10  ;;  %v860_v60 = vsel %vm855_vm9, %v848_v10, %v840_v54  ;;  %v846_v63 = vpop.permute.xlu1 %845 }
 0x273   :  { %v869_v26 = vsel %vm838_vm11, %v860_v60, 0.0  ;;  %v884_v17 = vadd.f32 %v876_v46, %v856_v35 }
 0x274   :  { %v885_v47 = vadd.f32 %v877_v31, %v869_v26 }
 0x275   :  { %v904_v50 = vadd.f32 %v897_v28, %v884_v17  ;;  %v844_v62 = vpop.permute.xlu0 %843 }
 0x276   :  { %v905_v2 = vadd.f32 %v901_v23, %v885_v47  ;;  %v854_v36 = vpop.permute.xlu1 %853 }
 0x277   :  { %v912_v55 = vmax.f32 %v904_v50, 0.0  ;;  %v859_v11 = vsel %vm855_vm9, %v846_v63, %v854_v36  ;;  %v863_v12 = vsel %vm855_vm9, %v854_v36, %v846_v63 }
 0x278   :  { %v913_v14 = vmax.f32 %v905_v2, 0.0  ;;  %v875_v40 = vsel %vm838_vm11, %v863_v12, 0.0  ;;  %v890_v57 = vadd.f32 %v882_v29, %v859_v11 }
 0x279   :  { %v852_v18 = vpop.permute.xlu0 %851  ;;  %v952_v59 = vpack.c.bf16 %v914_v8, %v912_v55  ;;  %v891_v6 = vadd.f32 %v883_v33, %v875_v40 }
 0x27a   :  { %v858_v44 = vsel %vm855_vm9, %v844_v62, %v852_v18  ;;  %v862_v43 = vsel %vm855_vm9, %v852_v18, %v844_v62  ;;  %v953_v61 = vpack.c.bf16 %v915_v42, %v913_v14  ;;  %v910_v19 = vadd.f32 %v897_v28, %v890_v57 }
 0x27b   :  { %v873_v30 = vsel %vm838_vm11, %v862_v43, 0.0  ;;  %v888_v45 = vadd.f32 %v880_v24, %v858_v44  ;;  %v911_v20 = vadd.f32 %v901_v23, %v891_v6 }
 0x27c   :  { %v889_v54 = vadd.f32 %v881_v1, %v873_v30  ;;  %1160 = vmatprep.mubr.bf16.mxu1 %v953_v61  ;;  %v918_v41 = vmax.f32 %v910_v19, 0.0 }
 0x27d   :  { %v908_v15 = vadd.f32 %v897_v28, %v888_v45  ;;  %1161 = vmatmul.mubr.bf16.vlgmr.msra.gmra.mrb[0].mxu1 %v952_v59  ;;  %v919_v56 = vmax.f32 %v911_v20, 0.0  ;;  %v956_v28 = vld [vmem:[%s2641_s8] sm:$0x3]  ;;  %s1771_s8 = smov [#allocation13]  }
 0x27e   :  { %v909_v58 = vadd.f32 %v901_v23, %v889_v54  ;;  %v1199_v23 = vld [vmem:[%s2643_s10] sm:$0x3]  ;;  %v961_v46 = vrot.slane %v956_v28, %v2692_v49  ;;  %v965_v0 = vrot.slane %v956_v28, %v2693_v53  ;;  %s1373_s10 = sshll.u32 %s1771_s8, 4  ;;  %s1374_s10 = int_to_ptr.vmem [resolvable:$true] %s1373_s10 }
 0x27f   :  { %v916_v52 = vmax.f32 %v908_v15, 0.0  ;;  %v1204_v4 = vrot.slane %v1199_v23, %v2692_v49  ;;  %v1208_v25 = vrot.slane %v1199_v23, %v2693_v53  ;;  %s1726_s26 = scalar_lea.vmem %s1374_s10, 1024  ;;  %p1731_p7 = scmp.lt.s32.totalorder %s1374_s10, %s1374_s10 }
 0x280   :  { %v917_v38 = vmax.f32 %v909_v58, 0.0  ;;  %p1727_p6 = scmp.ne.s32.totalorder %s1374_s10, %s1726_s26  ;;  %p1732_p8 = scmp.lt.s32.totalorder %s1726_s26, %s1726_s26 }
 0x281   :  { %v954_v22 = vpack.c.bf16 %v918_v41, %v916_v52 }
 0x282   :  { %v955_v34 = vpack.c.bf16 %v919_v56, %v917_v38  ;;  %p1733_p9 = por %p1732_p8, %p1731_p7 }
 0x284   :  { %1170 = vmatprep.mubr.bf16.mxu1 %v955_v34  ;;  %p1734_p10 = pnand %p1733_p9, %p1727_p6 }
 0x285   :  { %1171 = vmatmul.mubr.bf16.gmra.mrb[4].mxu1 %v954_v22 }
 0x2dc   :  { %v1325_v9 = vpop.f32.mrb[8].mxu0 }
 0x2dd   :  { %v1327_v13 = vpop.f32.mrb[9].mxu0 }
 0x2de   :  { %v1329_v51 = vpop.f32.mrb[10].mxu0 }
 0x2df   :  { %v1331_v5 = vpop.f32.mrb[11].mxu0 }
 0x2e4   :  { %v1335_v21 = vpop.f32.mrb[12].mxu0 }
 0x2e5   :  { %v1337_v39 = vpop.f32.mrb[13].mxu0 }
 0x2e6   :  { %v1339_v37 = vpop.f32.mrb[14].mxu0 }
 0x2e7   :  { %v1341_v32 = vpop.f32.mrb[15].mxu0 }
 0x350   :  { %v1162_v10 = vpop.f32.mrb[0].mxu1 }
 0x351   :  { %v1163_v31 = vadd.f32 %v1162_v10, %v961_v46  ;;  %v1164_v35 = vpop.f32.mrb[1].mxu1 }
 0x352   :  { %v1165_v60 = vadd.f32 %v1164_v35, %v965_v0  ;;  %v1166_v16 = vpop.f32.mrb[2].mxu1 }
 0x353   :  { %v1457_v26 = vadd.f32 %v1204_v4, %v1163_v31  ;;  %v1167_v17 = vadd.f32 %v1166_v16, %v961_v46  ;;  %v1168_v63 = vpop.f32.mrb[3].mxu1 }
 0x354   :  { %v1460_v3 = vadd.f32 %v1208_v25, %v1165_v60  ;;  %v1169_v48 = vadd.f32 %v1168_v63, %v965_v0 }
 0x355   :  { %v1458_v47 = vadd.f32 %v1457_v26, %v1325_v9  ;;  %v1463_v27 = vadd.f32 %v1204_v4, %v1167_v17 }
 0x356   :  { %v1461_v50 = vadd.f32 %v1460_v3, %v1327_v13  ;;  %v1466_v62 = vadd.f32 %v1208_v25, %v1169_v48 }
 0x357   :  { %v1352_v7 = vmax.f32 %v1458_v47, 0.0  ;;  %v1464_v1 = vadd.f32 %v1463_v27, %v1329_v51 }
 0x358   :  { %v1353_v2 = vmax.f32 %v1461_v50, 0.0  ;;  %v1467_v49 = vadd.f32 %v1466_v62, %v1331_v5  ;;  %v1172_v8 = vpop.f32.mrb[4].mxu1 }
 0x359   :  { %1360 = vst [vmem:[#allocation13] sm:$0xff] %v1352_v7  ;;  %v1354_v53 = vmax.f32 %v1464_v1, 0.0  ;;  %v1173_v29 = vadd.f32 %v1172_v8, %v961_v46  ;;  %v1174_v55 = vpop.f32.mrb[5].mxu1 }
 0x35a   :  { %1361 = vst [vmem:[#allocation13 + $0x8] sm:$0xff] %v1353_v2  ;;  %v1355_v36 = vmax.f32 %v1467_v49, 0.0  ;;  %v1175_v42 = vadd.f32 %v1174_v55, %v965_v0  ;;  %v1176_v33 = vpop.f32.mrb[6].mxu1 }
 0x35b   :  { %1362 = vst [vmem:[#allocation13 + $0x10] sm:$0xff] %v1354_v53  ;;  %v1469_v11 = vadd.f32 %v1204_v4, %v1173_v29  ;;  %v1177_v12 = vadd.f32 %v1176_v33, %v961_v46  ;;  %v1178_v14 = vpop.f32.mrb[7].mxu1 }
 0x35c   :  { %1363 = vst [vmem:[#allocation13 + $0x18] sm:$0xff] %v1355_v36  ;;  %v1472_v24 = vadd.f32 %v1208_v25, %v1175_v42  ;;  %v1179_v40 = vadd.f32 %v1178_v14, %v965_v0 }
 0x35d   :  { %v1470_v57 = vadd.f32 %v1469_v11, %v1335_v21  ;;  %v1475_v18 = vadd.f32 %v1204_v4, %v1177_v12 }
 0x35e   :  { %v1473_v59 = vadd.f32 %v1472_v24, %v1337_v39  ;;  %v1478_v6 = vadd.f32 %v1208_v25, %v1179_v40 }
 0x35f   :  { %v1356_v44 = vmax.f32 %v1470_v57, 0.0  ;;  %v1476_v43 = vadd.f32 %v1475_v18, %v1339_v37 }
 0x360   :  { %v1357_v61 = vmax.f32 %v1473_v59, 0.0  ;;  %v1479_v19 = vadd.f32 %v1478_v6, %v1341_v32 }
 0x361   :  { %1364 = vst [vmem:[#allocation13 + $0x20] sm:$0xff] %v1356_v44  ;;  %v1358_v30 = vmax.f32 %v1476_v43, 0.0 }
 0x362   :  { %1365 = vst [vmem:[#allocation13 + $0x28] sm:$0xff] %v1357_v61  ;;  %v1359_v45 = vmax.f32 %v1479_v19, 0.0 }
 0x363   :  { %1366 = vst [vmem:[#allocation13 + $0x30] sm:$0xff] %v1358_v30 }
 0x364   :  { %1367 = vst [vmem:[#allocation13 + $0x38] sm:$0xff] %v1359_v45 }
 0x365   :  { %1737 = shalt.err (!%p1734_p10)
}
 0x366   :  { %s1738_s28 = scalar_lea.hbm %s2644_s11, 1024 }
 0x367   :  { %p1739_p11 = scmp.ne.s32.totalorder %s2644_s11, %s1738_s28  ;;  %p1742_p12 = scmp.lt.u32.totalorder %s1738_s28, %s2644_s11 }
 0x369   :  { %p1744_p13 = pnand %p1742_p12, %p1739_p11 }
 0x36b   :  { %1747 = shalt.err (!%p1744_p13)
}
 0x36c   :  { %1379 = dma.vmem_to_hbm [thread:$0]  %s1374_s10, 1024, %s2644_s11, [#allocation4], %s1762_s1, %s1762_s1, %s1763_s18  }
 0x36d   :  { %1756 = dma.done.wait [#allocation4], 1024  }
 0x36e   :  { %1757 = vsyncadd [#allocation4], 4294966272 }
 0x36f   :  { %1383 = vsyncpa [#allocation3], 1 }
 0x370   :  { %1384 = vsyncpa [#allocation6], 1 }
 0x371   :  { %1385 = vsyncpa [#allocation9], 1 }
 0x372   :  { %1386 = vsyncpa [#allocation12], 1 }
 0x373   :  { %1387 = vsyncpa [#allocation4], 1 }

</bundles_post_ra>
